<compile_context>
chip_gen: v7x
topology: tpu7x:2x2x1
jax: 0.10.0
libtpu: 0.0.40
codegen_flags: <defaults>
</compile_context>

<pallas_src>
import functools

import jax
import jax.numpy as jnp
from jax.experimental import pallas as pl
from jax.experimental.pallas import tpu as pltpu


# rows of the packed parameter-vector slab, in order
_VEC_NAMES = ("bo", "g1", "be1", "ba", "bco",
              "bp1", "gp1", "bep1", "bp2", "gp2", "bep2",
              "g2", "be2", "bf1", "bf2", "g3", "be3")
_VIDX = {n: i for i, n in enumerate(_VEC_NAMES)}


def _layer_norm(x, g, b, eps=1e-5):
    # LayerNorm2d(normalized_shape=[C,1,1], dim=1): normalize over channel axis.
    mu = jnp.mean(x, axis=-1, keepdims=True)
    xc = x - mu
    var = jnp.mean(xc * xc, axis=-1, keepdims=True)
    return xc * jax.lax.rsqrt(var + eps) * g + b


def _zero_map(ndim, *_):
    return (0,) * ndim


def _make_kernel(bs, nq, num_heads):
    H = num_heads

    def kernel(q_ref, qp_ref, v_ref, m_ref, rp_ref,
               wq_ref, wk_ref, wv_ref, bq_ref, bk_ref, bv_ref,
               wo_ref, wa_ref, wco_ref, wp1_ref, wp2_ref, wf1_ref, wf2_ref,
               vec_ref, out_ref):
        E = wq_ref.shape[1]          # wq_ref: (H, E, dh)
        dh = wq_ref.shape[2]
        F = wf1_ref.shape[1]
        G = wa_ref.shape[1]
        T = bs * nq
        BH = bs * H
        scale = 1.0 / float(dh) ** 0.5

        vec = vec_ref[...]           # (len(_VEC_NAMES), maxdim)

        def vrow(name, n):
            i = _VIDX[name]
            return vec[i:i + 1, :n]  # (1, n)

        def linear(x, w_ref, bname, n):
            return (jnp.dot(x, w_ref[...], preferred_element_type=jnp.float32)
                    + vrow(bname, n))

        q = q_ref[...]               # (T, E)
        qp = qp_ref[...]             # (T, E)
        tgt = q
        qpe = q + qp                 # pos_add1

        # ---------- multi-head self attention (batched over bs*H, no head loop) ----------
        def act_bh(x):               # (T, E) -> (BH, nq, E), replicated across heads
            x4 = jnp.broadcast_to(x.reshape(bs, 1, nq, E), (bs, H, nq, E))
            return x4.reshape(BH, nq, E)

        def par_bh(ref):             # (H, a, b) -> (BH, a, b), replicated across batch
            w = ref[...]
            wb = jnp.broadcast_to(w[None], (bs,) + w.shape)
            return wb.reshape((BH,) + w.shape[1:])

        qpe_b = act_bh(qpe)
        tgt_b = act_bh(tgt)
        qh = jnp.einsum("bqe,bed->bqd", qpe_b, par_bh(wq_ref),
                        preferred_element_type=jnp.float32) + par_bh(bq_ref)
        kh = jnp.einsum("bqe,bed->bqd", qpe_b, par_bh(wk_ref),
                        preferred_element_type=jnp.float32) + par_bh(bk_ref)
        vh = jnp.einsum("bqe,bed->bqd", tgt_b, par_bh(wv_ref),
                        preferred_element_type=jnp.float32) + par_bh(bv_ref)

        s = jnp.einsum("bqd,bkd->bqk", qh * scale, kh,
                       preferred_element_type=jnp.float32)          # (BH, nq, nq)
        s = s - jnp.max(s, axis=-1, keepdims=True)
        p = jnp.exp(s)
        p = p * pl.reciprocal(jnp.sum(p, axis=-1, keepdims=True), approx=True)
        ctx = jnp.einsum("bqk,bkd->bqd", p, vh,
                         preferred_element_type=jnp.float32)         # (BH, nq, dh)
        ho = jnp.einsum("bqd,bde->bqe", ctx, par_bh(wo_ref),
                        preferred_element_type=jnp.float32)          # (BH, nq, E)
        attn = jnp.sum(ho.reshape(bs, H, nq, E), axis=1).reshape(T, E)
        tgt2 = attn + vrow("bo", E)

        tgt = tgt + tgt2                                             # dropout1_add
        tgt = _layer_norm(tgt, vrow("g1", E), vrow("be1", E))        # norm1
        tgt = tgt + qp                                               # pos_add2

        # ---------- Detr3d cross attention ----------
        residual = tgt
        logits = linear(tgt, wa_ref, "ba", G)                        # (T, G)
        a_t = jax.nn.sigmoid(logits).T * m_ref[...]                  # masks_mul, (G, T)
        acc_t = jnp.sum(a_t * v_ref[...], axis=1)                    # (E, G, T) -> (E, T)
        co = linear(acc_t.T, wco_ref, "bco", E)                      # out_proj

        # position_encoder: conv(3->E) -> LN -> ReLU -> conv -> LN -> ReLU
        pe = linear(rp_ref[...], wp1_ref, "bp1", E)                  # (T, 8) @ (8, E)
        pe = jax.nn.relu(_layer_norm(pe, vrow("gp1", E), vrow("bep1", E)))
        pe = linear(pe, wp2_ref, "bp2", E)
        pe = jax.nn.relu(_layer_norm(pe, vrow("gp2", E), vrow("bep2", E)))

        tgt2 = co + pe + residual                                    # pos_add + shortcut_add
        tgt = tgt + tgt2                                             # dropout2_add
        tgt = _layer_norm(tgt, vrow("g2", E), vrow("be2", E))        # norm2

        # ---------- FFN ----------
        h1 = jax.nn.relu(linear(tgt, wf1_ref, "bf1", F))
        h2 = linear(h1, wf2_ref, "bf2", E)
        tgt = tgt + h2                                               # shortcut_add
        tgt = _layer_norm(tgt, vrow("g3", E), vrow("be3", E))        # norm3

        out_ref[...] = tgt

    return kernel


def init_params(key, embed_dims, feedforward_channels, num_groups):
    E, F, G = embed_dims, feedforward_channels, num_groups
    ks = jax.random.split(key, 20)

    def w(k, shape, scale=0.1):
        return jax.random.normal(k, shape, jnp.float32) * scale

    ones = lambda n: jnp.ones((n,), jnp.float32)
    zeros = lambda n: jnp.zeros((n,), jnp.float32)

    # weight matrices stored as (in_ch, out_ch), i.e. transposed 1x1-conv kernels
    return dict(
        wq=w(ks[0], (E, E)), bq=w(ks[10], (E,), 0.02),
        wk=w(ks[1], (E, E)), bk=w(ks[11], (E,), 0.02),
        wv=w(ks[2], (E, E)), bv=w(ks[12], (E,), 0.02),
        wo=w(ks[3], (E, E)), bo=w(ks[13], (E,), 0.02),
        g1=ones(E), be1=zeros(E),
        wa=w(ks[4], (E, G)), ba=w(ks[14], (G,), 0.02),
        wco=w(ks[5], (E, E)), bco=w(ks[15], (E,), 0.02),
        wp1=w(ks[6], (3, E)), bp1=w(ks[16], (E,), 0.02),
        gp1=ones(E), bep1=zeros(E),
        wp2=w(ks[7], (E, E)), bp2=w(ks[17], (E,), 0.02),
        gp2=ones(E), bep2=zeros(E),
        g2=ones(E), be2=zeros(E),
        wf1=w(ks[8], (E, F)), bf1=w(ks[18], (F,), 0.02),
        wf2=w(ks[9], (F, E)), bf2=w(ks[19], (E,), 0.02),
        g3=ones(E), be3=zeros(E),
    )


def _run_layer(q_flat, qp_flat, v_t, m_t, rp_pad, params, *, num_heads, bs, nq):
    T, E = q_flat.shape
    H = num_heads
    dh = E // H
    F = params["wf1"].shape[1]
    G = params["wa"].shape[1]

    # head-split projection weights / biases (wrapper-side, free XLA reshapes)
    wq_h = params["wq"].reshape(E, H, dh).transpose(1, 0, 2)   # (H, E, dh)
    wk_h = params["wk"].reshape(E, H, dh).transpose(1, 0, 2)
    wv_h = params["wv"].reshape(E, H, dh).transpose(1, 0, 2)
    bq_h = params["bq"].reshape(H, 1, dh)
    bk_h = params["bk"].reshape(H, 1, dh)
    bv_h = params["bv"].reshape(H, 1, dh)
    wo_h = params["wo"].reshape(H, dh, E)                      # rows grouped (head, dh)
    wp1_p = jnp.pad(params["wp1"], ((0, 8 - params["wp1"].shape[0]), (0, 0)))  # (8, E)

    # pack the small parameter vectors into one slab
    maxdim = max(E, F, G)
    rows = []
    for name in _VEC_NAMES:
        vv = params[name].reshape(-1).astype(jnp.float32)
        rows.append(jnp.pad(vv, (0, maxdim - vv.shape[0])))
    vec_slab = jnp.stack(rows, axis=0)                         # (17, maxdim)

    operands = [q_flat, qp_flat, v_t, m_t, rp_pad,
                wq_h, wk_h, wv_h, bq_h, bk_h, bv_h,
                wo_h, params["wa"], params["wco"], wp1_p, params["wp2"],
                params["wf1"], params["wf2"], vec_slab]

    in_specs = [pl.BlockSpec(a.shape, functools.partial(_zero_map, a.ndim))
                for a in operands]

    kernel = _make_kernel(bs, nq, num_heads)
    out = pl.pallas_call(
        kernel,
        out_shape=jax.ShapeDtypeStruct((T, E), jnp.float32),
        grid=(1,),
        in_specs=in_specs,
        out_specs=pl.BlockSpec((T, E), lambda i: (0, 0)),
        compiler_params=pltpu.CompilerParams(dimension_semantics=("arbitrary",)),
    )(*operands)
    return out


def detr3d_decoder(query, value, query_pos, reference_points, masks, layers_params, *,
                   num_heads, num_views, num_levels, num_points):
    # TODO(synk): P != 1 does not broadcast in the reference PyTorch code either.
    assert num_points == 1, "Detr3dCrossAtten broadcast only valid for num_points == 1"
    bs, E, nq, _ = query.shape
    assert E % num_heads == 0
    V, L = num_views, num_levels
    G = V * L * num_points
    T = bs * nq

    # ---- layout glue (NCHW -> token-major channels-last, done once in XLA) ----
    q_flat = jnp.transpose(query[..., 0], (0, 2, 1)).reshape(T, E).astype(jnp.float32)
    qp_flat = jnp.transpose(query_pos[..., 0], (0, 2, 1)).reshape(T, E).astype(jnp.float32)

    # value: (bs*V, E*L, nq, 1) -> (E, G, T), same grouping as torch .view(bs,-1,C,H,W)
    v = value[..., 0].reshape(bs, V, L, E, nq)
    v_t = jnp.transpose(v, (3, 1, 2, 0, 4)).reshape(E, G, T).astype(jnp.float32)

    # masks: (bs, G, nq, 1) -> (G, T)
    m_t = jnp.transpose(masks[..., 0], (1, 0, 2)).reshape(G, T).astype(jnp.float32)

    # reference points: (bs, 3, nq, 1) -> (T, 8) zero padded for one MXU matmul
    rp = jnp.transpose(reference_points[..., 0], (0, 2, 1)).reshape(T, 3)
    rp_pad = jnp.pad(rp, ((0, 0), (0, 5))).astype(jnp.float32)

    outs = []
    for params in layers_params:
        q_flat = _run_layer(q_flat, qp_flat, v_t, m_t, rp_pad, params,
                            num_heads=num_heads, bs=bs, nq=nq)
        # back to PyTorch NCHW: (bs, E, nq, 1)
        outs.append(jnp.transpose(q_flat.reshape(bs, nq, E), (0, 2, 1))[..., None])
    return outs


if __name__ == "__main__":
    # small config consistent with the module
    bs, embed_dims, num_query = 2, 32, 8
    num_heads, num_levels, num_views, num_points = 4, 2, 2, 1
    feedforward_channels = 64
    num_layer = 2
    G = num_views * num_levels * num_points

    key = jax.random.PRNGKey(0)
    k1, k2, k3, k4, k5, kp = jax.random.split(key, 6)
    query = jax.random.normal(k1, (bs, embed_dims, num_query, 1), jnp.float32)
    query_pos = jax.random.normal(k2, (bs, embed_dims, num_query, 1), jnp.float32)
    value = jax.random.normal(
        k3, (bs * num_views, embed_dims * num_levels, num_query, 1), jnp.float32)
    reference_points = jax.random.uniform(k4, (bs, 3, num_query, 1), dtype=jnp.float32)
    masks = (jax.random.uniform(k5, (bs, G, num_query, 1)) > 0.3).astype(jnp.float32)

    layer_keys = jax.random.split(kp, num_layer)
    layers_params = [init_params(k, embed_dims, feedforward_channels, G)
                     for k in layer_keys]

    outs = detr3d_decoder(
        query, value, query_pos, reference_points, masks, layers_params,
        num_heads=num_heads, num_views=num_views,
        num_levels=num_levels, num_points=num_points)
    outs = jax.block_until_ready(outs)

    assert len(outs) == num_layer
    for o in outs:
        assert o.shape == (bs, embed_dims, num_query, 1)
        assert bool(jnp.all(jnp.isfinite(o)))
    print("KERNEL_OK")
</pallas_src>

<mosaic_0001>
module attributes {stable_mosaic.version = 11 : i64} {
  func.func @kernel(%arg0: i32, %arg1: memref<16x32xf32, #tpu.memory_space<vmem>>, %arg2: memref<16x32xf32, #tpu.memory_space<vmem>>, %arg3: memref<32x4x16xf32, #tpu.memory_space<vmem>>, %arg4: memref<4x16xf32, #tpu.memory_space<vmem>>, %arg5: memref<16x8xf32, #tpu.memory_space<vmem>>, %arg6: memref<4x32x8xf32, #tpu.memory_space<vmem>>, %arg7: memref<4x32x8xf32, #tpu.memory_space<vmem>>, %arg8: memref<4x32x8xf32, #tpu.memory_space<vmem>>, %arg9: memref<4x1x8xf32, #tpu.memory_space<vmem>>, %arg10: memref<4x1x8xf32, #tpu.memory_space<vmem>>, %arg11: memref<4x1x8xf32, #tpu.memory_space<vmem>>, %arg12: memref<4x8x32xf32, #tpu.memory_space<vmem>>, %arg13: memref<32x4xf32, #tpu.memory_space<vmem>>, %arg14: memref<32x32xf32, #tpu.memory_space<vmem>>, %arg15: memref<8x32xf32, #tpu.memory_space<vmem>>, %arg16: memref<32x32xf32, #tpu.memory_space<vmem>>, %arg17: memref<32x64xf32, #tpu.memory_space<vmem>>, %arg18: memref<64x32xf32, #tpu.memory_space<vmem>>, %arg19: memref<17x64xf32, #tpu.memory_space<vmem>>, %arg20: memref<16x32xf32, #tpu.memory_space<vmem>>) attributes {dimension_semantics = [#tpu.dimension_semantics<arbitrary>], iteration_bounds = array<i64: 1>, scalar_prefetch = 0 : i64, scratch_operands = 0 : i64, tpu.core_type = #tpu.core_type<tc>, window_params = [{pipeline_mode = #tpu.pipeline_mode<synchronous>, transform_indices = @transform_0, window_bounds = array<i64: 16, 32>}, {pipeline_mode = #tpu.pipeline_mode<synchronous>, transform_indices = @transform_1, window_bounds = array<i64: 16, 32>}, {pipeline_mode = #tpu.pipeline_mode<synchronous>, transform_indices = @transform_2, window_bounds = array<i64: 32, 4, 16>}, {pipeline_mode = #tpu.pipeline_mode<synchronous>, transform_indices = @transform_3, window_bounds = array<i64: 4, 16>}, {pipeline_mode = #tpu.pipeline_mode<synchronous>, transform_indices = @transform_4, window_bounds = array<i64: 16, 8>}, {pipeline_mode = #tpu.pipeline_mode<synchronous>, transform_indices = @transform_5, window_bounds = array<i64: 4, 32, 8>}, {pipeline_mode = #tpu.pipeline_mode<synchronous>, transform_indices = @transform_6, window_bounds = array<i64: 4, 32, 8>}, {pipeline_mode = #tpu.pipeline_mode<synchronous>, transform_indices = @transform_7, window_bounds = array<i64: 4, 32, 8>}, {pipeline_mode = #tpu.pipeline_mode<synchronous>, transform_indices = @transform_8, window_bounds = array<i64: 4, 1, 8>}, {pipeline_mode = #tpu.pipeline_mode<synchronous>, transform_indices = @transform_9, window_bounds = array<i64: 4, 1, 8>}, {pipeline_mode = #tpu.pipeline_mode<synchronous>, transform_indices = @transform_10, window_bounds = array<i64: 4, 1, 8>}, {pipeline_mode = #tpu.pipeline_mode<synchronous>, transform_indices = @transform_11, window_bounds = array<i64: 4, 8, 32>}, {pipeline_mode = #tpu.pipeline_mode<synchronous>, transform_indices = @transform_12, window_bounds = array<i64: 32, 4>}, {pipeline_mode = #tpu.pipeline_mode<synchronous>, transform_indices = @transform_13, window_bounds = array<i64: 32, 32>}, {pipeline_mode = #tpu.pipeline_mode<synchronous>, transform_indices = @transform_14, window_bounds = array<i64: 8, 32>}, {pipeline_mode = #tpu.pipeline_mode<synchronous>, transform_indices = @transform_15, window_bounds = array<i64: 32, 32>}, {pipeline_mode = #tpu.pipeline_mode<synchronous>, transform_indices = @transform_16, window_bounds = array<i64: 32, 64>}, {pipeline_mode = #tpu.pipeline_mode<synchronous>, transform_indices = @transform_17, window_bounds = array<i64: 64, 32>}, {pipeline_mode = #tpu.pipeline_mode<synchronous>, transform_indices = @transform_18, window_bounds = array<i64: 17, 64>}, {pipeline_mode = #tpu.pipeline_mode<synchronous>, transform_indices = @transform_19, window_bounds = array<i64: 16, 32>}]} {
    %c0 = arith.constant 0 : index
    %c0_0 = arith.constant 0 : index
    %0 = vector.load %arg19[%c0, %c0_0] : memref<17x64xf32, #tpu.memory_space<vmem>>, vector<17x64xf32>
    %c0_1 = arith.constant 0 : index
    %c0_2 = arith.constant 0 : index
    %1 = vector.load %arg1[%c0_1, %c0_2] : memref<16x32xf32, #tpu.memory_space<vmem>>, vector<16x32xf32>
    %c0_3 = arith.constant 0 : index
    %c0_4 = arith.constant 0 : index
    %2 = vector.load %arg2[%c0_3, %c0_4] : memref<16x32xf32, #tpu.memory_space<vmem>>, vector<16x32xf32>
    %3 = arith.addf %1, %2 : vector<16x32xf32>
    %4 = vector.shape_cast %3 : vector<16x32xf32> to vector<2x1x8x32xf32>
    %5 = vector.shape_cast %4 : vector<2x1x8x32xf32> to vector<2x1x8x32xf32>
    %6 = vector.broadcast %5 : vector<2x1x8x32xf32> to vector<2x4x8x32xf32>
    %7 = vector.shape_cast %6 : vector<2x4x8x32xf32> to vector<8x8x32xf32>
    %8 = vector.shape_cast %1 : vector<16x32xf32> to vector<2x1x8x32xf32>
    %9 = vector.shape_cast %8 : vector<2x1x8x32xf32> to vector<2x1x8x32xf32>
    %10 = vector.broadcast %9 : vector<2x1x8x32xf32> to vector<2x4x8x32xf32>
    %11 = vector.shape_cast %10 : vector<2x4x8x32xf32> to vector<8x8x32xf32>
    %c0_5 = arith.constant 0 : index
    %c0_6 = arith.constant 0 : index
    %c0_7 = arith.constant 0 : index
    %12 = vector.load %arg6[%c0_5, %c0_6, %c0_7] : memref<4x32x8xf32, #tpu.memory_space<vmem>>, vector<4x32x8xf32>
    %13 = vector.shape_cast %12 : vector<4x32x8xf32> to vector<1x4x32x8xf32>
    %14 = vector.shape_cast %13 : vector<1x4x32x8xf32> to vector<1x4x32x8xf32>
    %15 = vector.broadcast %14 : vector<1x4x32x8xf32> to vector<2x4x32x8xf32>
    %16 = vector.shape_cast %15 : vector<2x4x32x8xf32> to vector<8x32x8xf32>
    "tpu.trace_start"() <{level = 10 : i32, message = "bqe,bed->bqd"}> : () -> ()
    %cst = arith.constant dense<0.000000e+00> : vector<8x8x8xf32>
    %17 = tpu.matmul %7, %16, %cst {dimension_numbers = #tpu.dot_dimension_numbers<[2], [1], [1], [2], [0, 0, 0, 1, 1, 2], [0], [0]>} : vector<8x8x32xf32>, vector<8x32x8xf32>, vector<8x8x8xf32> -> vector<8x8x8xf32>
    "tpu.trace_stop"() : () -> ()
    %c0_8 = arith.constant 0 : index
    %c0_9 = arith.constant 0 : index
    %c0_10 = arith.constant 0 : index
    %18 = vector.load %arg9[%c0_8, %c0_9, %c0_10] : memref<4x1x8xf32, #tpu.memory_space<vmem>>, vector<4x1x8xf32>
    %19 = vector.shape_cast %18 : vector<4x1x8xf32> to vector<1x4x1x8xf32>
    %20 = vector.shape_cast %19 : vector<1x4x1x8xf32> to vector<1x4x1x8xf32>
    %21 = vector.broadcast %20 : vector<1x4x1x8xf32> to vector<2x4x1x8xf32>
    %22 = vector.shape_cast %21 : vector<2x4x1x8xf32> to vector<8x1x8xf32>
    %23 = vector.broadcast %22 : vector<8x1x8xf32> to vector<8x8x8xf32>
    %24 = arith.addf %17, %23 : vector<8x8x8xf32>
    %c0_11 = arith.constant 0 : index
    %c0_12 = arith.constant 0 : index
    %c0_13 = arith.constant 0 : index
    %25 = vector.load %arg7[%c0_11, %c0_12, %c0_13] : memref<4x32x8xf32, #tpu.memory_space<vmem>>, vector<4x32x8xf32>
    %26 = vector.shape_cast %25 : vector<4x32x8xf32> to vector<1x4x32x8xf32>
    %27 = vector.shape_cast %26 : vector<1x4x32x8xf32> to vector<1x4x32x8xf32>
    %28 = vector.broadcast %27 : vector<1x4x32x8xf32> to vector<2x4x32x8xf32>
    %29 = vector.shape_cast %28 : vector<2x4x32x8xf32> to vector<8x32x8xf32>
    "tpu.trace_start"() <{level = 10 : i32, message = "bqe,bed->bqd"}> : () -> ()
    %cst_14 = arith.constant dense<0.000000e+00> : vector<8x8x8xf32>
    %30 = tpu.matmul %7, %29, %cst_14 {dimension_numbers = #tpu.dot_dimension_numbers<[2], [1], [1], [2], [0, 0, 0, 1, 1, 2], [0], [0]>} : vector<8x8x32xf32>, vector<8x32x8xf32>, vector<8x8x8xf32> -> vector<8x8x8xf32>
    "tpu.trace_stop"() : () -> ()
    %c0_15 = arith.constant 0 : index
    %c0_16 = arith.constant 0 : index
    %c0_17 = arith.constant 0 : index
    %31 = vector.load %arg10[%c0_15, %c0_16, %c0_17] : memref<4x1x8xf32, #tpu.memory_space<vmem>>, vector<4x1x8xf32>
    %32 = vector.shape_cast %31 : vector<4x1x8xf32> to vector<1x4x1x8xf32>
    %33 = vector.shape_cast %32 : vector<1x4x1x8xf32> to vector<1x4x1x8xf32>
    %34 = vector.broadcast %33 : vector<1x4x1x8xf32> to vector<2x4x1x8xf32>
    %35 = vector.shape_cast %34 : vector<2x4x1x8xf32> to vector<8x1x8xf32>
    %36 = vector.broadcast %35 : vector<8x1x8xf32> to vector<8x8x8xf32>
    %37 = arith.addf %30, %36 : vector<8x8x8xf32>
    %c0_18 = arith.constant 0 : index
    %c0_19 = arith.constant 0 : index
    %c0_20 = arith.constant 0 : index
    %38 = vector.load %arg8[%c0_18, %c0_19, %c0_20] : memref<4x32x8xf32, #tpu.memory_space<vmem>>, vector<4x32x8xf32>
    %39 = vector.shape_cast %38 : vector<4x32x8xf32> to vector<1x4x32x8xf32>
    %40 = vector.shape_cast %39 : vector<1x4x32x8xf32> to vector<1x4x32x8xf32>
    %41 = vector.broadcast %40 : vector<1x4x32x8xf32> to vector<2x4x32x8xf32>
    %42 = vector.shape_cast %41 : vector<2x4x32x8xf32> to vector<8x32x8xf32>
    "tpu.trace_start"() <{level = 10 : i32, message = "bqe,bed->bqd"}> : () -> ()
    %cst_21 = arith.constant dense<0.000000e+00> : vector<8x8x8xf32>
    %43 = tpu.matmul %11, %42, %cst_21 {dimension_numbers = #tpu.dot_dimension_numbers<[2], [1], [1], [2], [0, 0, 0, 1, 1, 2], [0], [0]>} : vector<8x8x32xf32>, vector<8x32x8xf32>, vector<8x8x8xf32> -> vector<8x8x8xf32>
    "tpu.trace_stop"() : () -> ()
    %c0_22 = arith.constant 0 : index
    %c0_23 = arith.constant 0 : index
    %c0_24 = arith.constant 0 : index
    %44 = vector.load %arg11[%c0_22, %c0_23, %c0_24] : memref<4x1x8xf32, #tpu.memory_space<vmem>>, vector<4x1x8xf32>
    %45 = vector.shape_cast %44 : vector<4x1x8xf32> to vector<1x4x1x8xf32>
    %46 = vector.shape_cast %45 : vector<1x4x1x8xf32> to vector<1x4x1x8xf32>
    %47 = vector.broadcast %46 : vector<1x4x1x8xf32> to vector<2x4x1x8xf32>
    %48 = vector.shape_cast %47 : vector<2x4x1x8xf32> to vector<8x1x8xf32>
    %49 = vector.broadcast %48 : vector<8x1x8xf32> to vector<8x8x8xf32>
    %50 = arith.addf %43, %49 : vector<8x8x8xf32>
    %cst_25 = arith.constant 0.353553385 : f32
    %51 = vector.broadcast %cst_25 : f32 to vector<8x8x8xf32>
    %52 = arith.mulf %24, %51 : vector<8x8x8xf32>
    "tpu.trace_start"() <{level = 10 : i32, message = "bqd,bkd->bqk"}> : () -> ()
    %cst_26 = arith.constant dense<0.000000e+00> : vector<8x8x8xf32>
    %53 = tpu.matmul %52, %37, %cst_26 {dimension_numbers = #tpu.dot_dimension_numbers<[2], [2], [1], [1], [0, 0, 0, 1, 1, 1], [0], [0]>} : vector<8x8x8xf32>, vector<8x8x8xf32>, vector<8x8x8xf32> -> vector<8x8x8xf32>
    "tpu.trace_stop"() : () -> ()
    %cst_27 = arith.constant dense<0xFF800000> : vector<8x8xf32>
    %54 = vector.multi_reduction <maximumf>, %53, %cst_27 [2] : vector<8x8x8xf32> to vector<8x8xf32>
    %55 = vector.shape_cast %54 : vector<8x8xf32> to vector<8x8x1xf32>
    %56 = vector.broadcast %55 : vector<8x8x1xf32> to vector<8x8x8xf32>
    %57 = arith.subf %53, %56 : vector<8x8x8xf32>
    %58 = math.exp %57 : vector<8x8x8xf32>
    %cst_28 = arith.constant dense<0.000000e+00> : vector<8x8xf32>
    %59 = vector.multi_reduction <add>, %58, %cst_28 [2] : vector<8x8x8xf32> to vector<8x8xf32>
    %60 = vector.shape_cast %59 : vector<8x8xf32> to vector<8x8x1xf32>
    %61 = tpu.reciprocal %60 {approx = true} : vector<8x8x1xf32> -> vector<8x8x1xf32>
    %62 = vector.broadcast %61 : vector<8x8x1xf32> to vector<8x8x8xf32>
    %63 = arith.mulf %58, %62 : vector<8x8x8xf32>
    "tpu.trace_start"() <{level = 10 : i32, message = "bqk,bkd->bqd"}> : () -> ()
    %cst_29 = arith.constant dense<0.000000e+00> : vector<8x8x8xf32>
    %64 = tpu.matmul %63, %50, %cst_29 {dimension_numbers = #tpu.dot_dimension_numbers<[2], [1], [1], [2], [0, 0, 0, 1, 1, 2], [0], [0]>} : vector<8x8x8xf32>, vector<8x8x8xf32>, vector<8x8x8xf32> -> vector<8x8x8xf32>
    "tpu.trace_stop"() : () -> ()
    %c0_30 = arith.constant 0 : index
    %c0_31 = arith.constant 0 : index
    %c0_32 = arith.constant 0 : index
    %65 = vector.load %arg12[%c0_30, %c0_31, %c0_32] : memref<4x8x32xf32, #tpu.memory_space<vmem>>, vector<4x8x32xf32>
    %66 = vector.shape_cast %65 : vector<4x8x32xf32> to vector<1x4x8x32xf32>
    %67 = vector.shape_cast %66 : vector<1x4x8x32xf32> to vector<1x4x8x32xf32>
    %68 = vector.broadcast %67 : vector<1x4x8x32xf32> to vector<2x4x8x32xf32>
    %69 = vector.shape_cast %68 : vector<2x4x8x32xf32> to vector<8x8x32xf32>
    "tpu.trace_start"() <{level = 10 : i32, message = "bqd,bde->bqe"}> : () -> ()
    %cst_33 = arith.constant dense<0.000000e+00> : vector<8x8x32xf32>
    %70 = tpu.matmul %64, %69, %cst_33 {dimension_numbers = #tpu.dot_dimension_numbers<[2], [1], [1], [2], [0, 0, 0, 1, 1, 2], [0], [0]>} : vector<8x8x8xf32>, vector<8x8x32xf32>, vector<8x8x32xf32> -> vector<8x8x32xf32>
    "tpu.trace_stop"() : () -> ()
    %71 = vector.shape_cast %70 : vector<8x8x32xf32> to vector<2x4x8x32xf32>
    %cst_34 = arith.constant dense<0.000000e+00> : vector<2x8x32xf32>
    %72 = vector.multi_reduction <add>, %71, %cst_34 [1] : vector<2x4x8x32xf32> to vector<2x8x32xf32>
    %73 = vector.shape_cast %72 : vector<2x8x32xf32> to vector<16x32xf32>
    %74 = vector.extract_strided_slice %0 {offsets = [0, 0], sizes = [1, 32], strides = [1, 1]} : vector<17x64xf32> to vector<1x32xf32>
    %75 = vector.broadcast %74 : vector<1x32xf32> to vector<16x32xf32>
    %76 = arith.addf %73, %75 : vector<16x32xf32>
    %77 = arith.addf %1, %76 : vector<16x32xf32>
    %78 = vector.extract_strided_slice %0 {offsets = [1, 0], sizes = [1, 32], strides = [1, 1]} : vector<17x64xf32> to vector<1x32xf32>
    %79 = vector.extract_strided_slice %0 {offsets = [2, 0], sizes = [1, 32], strides = [1, 1]} : vector<17x64xf32> to vector<1x32xf32>
    %cst_35 = arith.constant dense<0.000000e+00> : vector<16xf32>
    %80 = vector.multi_reduction <add>, %77, %cst_35 [1] : vector<16x32xf32> to vector<16xf32>
    %81 = vector.shape_cast %80 : vector<16xf32> to vector<16x1xf32>
    %cst_36 = arith.constant 3.200000e+01 : f32
    %82 = vector.broadcast %cst_36 : f32 to vector<16x1xf32>
    %83 = arith.divf %81, %82 : vector<16x1xf32>
    %84 = vector.broadcast %83 : vector<16x1xf32> to vector<16x32xf32>
    %85 = arith.subf %77, %84 : vector<16x32xf32>
    %86 = arith.mulf %85, %85 : vector<16x32xf32>
    %cst_37 = arith.constant dense<0.000000e+00> : vector<16xf32>
    %87 = vector.multi_reduction <add>, %86, %cst_37 [1] : vector<16x32xf32> to vector<16xf32>
    %88 = vector.shape_cast %87 : vector<16xf32> to vector<16x1xf32>
    %cst_38 = arith.constant 3.200000e+01 : f32
    %89 = vector.broadcast %cst_38 : f32 to vector<16x1xf32>
    %90 = arith.divf %88, %89 : vector<16x1xf32>
    %cst_39 = arith.constant 9.99999974E-6 : f32
    %91 = vector.broadcast %cst_39 : f32 to vector<16x1xf32>
    %92 = arith.addf %90, %91 : vector<16x1xf32>
    %93 = math.rsqrt %92 : vector<16x1xf32>
    %94 = vector.broadcast %93 : vector<16x1xf32> to vector<16x32xf32>
    %95 = arith.mulf %85, %94 : vector<16x32xf32>
    %96 = vector.broadcast %78 : vector<1x32xf32> to vector<16x32xf32>
    %97 = arith.mulf %95, %96 : vector<16x32xf32>
    %98 = vector.broadcast %79 : vector<1x32xf32> to vector<16x32xf32>
    %99 = arith.addf %97, %98 : vector<16x32xf32>
    %100 = arith.addf %99, %2 : vector<16x32xf32>
    %c0_40 = arith.constant 0 : index
    %c0_41 = arith.constant 0 : index
    %101 = vector.load %arg13[%c0_40, %c0_41] : memref<32x4xf32, #tpu.memory_space<vmem>>, vector<32x4xf32>
    %cst_42 = arith.constant dense<0.000000e+00> : vector<16x4xf32>
    %102 = tpu.matmul %100, %101, %cst_42 {dimension_numbers = #tpu.dot_dimension_numbers<[1], [0], [0], [1], [0, 0, 1, 1], [], []>} : vector<16x32xf32>, vector<32x4xf32>, vector<16x4xf32> -> vector<16x4xf32>
    %103 = vector.extract_strided_slice %0 {offsets = [3, 0], sizes = [1, 4], strides = [1, 1]} : vector<17x64xf32> to vector<1x4xf32>
    %104 = vector.broadcast %103 : vector<1x4xf32> to vector<16x4xf32>
    %105 = arith.addf %102, %104 : vector<16x4xf32>
    %106 = arith.negf %105 : vector<16x4xf32>
    %107 = math.exp %106 : vector<16x4xf32>
    %cst_43 = arith.constant 1.000000e+00 : f32
    %108 = vector.broadcast %cst_43 : f32 to vector<16x4xf32>
    %109 = arith.addf %108, %107 : vector<16x4xf32>
    %110 = arith.divf %108, %109 : vector<16x4xf32>
    %111 = tpu.transpose %110, [1, 0] : vector<16x4xf32> -> vector<4x16xf32>
    %c0_44 = arith.constant 0 : index
    %c0_45 = arith.constant 0 : index
    %112 = vector.load %arg4[%c0_44, %c0_45] : memref<4x16xf32, #tpu.memory_space<vmem>>, vector<4x16xf32>
    %113 = arith.mulf %111, %112 : vector<4x16xf32>
    %c0_46 = arith.constant 0 : index
    %c0_47 = arith.constant 0 : index
    %c0_48 = arith.constant 0 : index
    %114 = vector.load %arg3[%c0_46, %c0_47, %c0_48] : memref<32x4x16xf32, #tpu.memory_space<vmem>>, vector<32x4x16xf32>
    %115 = vector.shape_cast %113 : vector<4x16xf32> to vector<1x4x16xf32>
    %116 = vector.broadcast %115 : vector<1x4x16xf32> to vector<32x4x16xf32>
    %117 = arith.mulf %116, %114 : vector<32x4x16xf32>
    %cst_49 = arith.constant dense<0.000000e+00> : vector<32x16xf32>
    %118 = vector.multi_reduction <add>, %117, %cst_49 [1] : vector<32x4x16xf32> to vector<32x16xf32>
    %119 = tpu.transpose %118, [1, 0] : vector<32x16xf32> -> vector<16x32xf32>
    %c0_50 = arith.constant 0 : index
    %c0_51 = arith.constant 0 : index
    %120 = vector.load %arg14[%c0_50, %c0_51] : memref<32x32xf32, #tpu.memory_space<vmem>>, vector<32x32xf32>
    %cst_52 = arith.constant dense<0.000000e+00> : vector<16x32xf32>
    %121 = tpu.matmul %119, %120, %cst_52 {dimension_numbers = #tpu.dot_dimension_numbers<[1], [0], [0], [1], [0, 0, 1, 1], [], []>} : vector<16x32xf32>, vector<32x32xf32>, vector<16x32xf32> -> vector<16x32xf32>
    %122 = vector.extract_strided_slice %0 {offsets = [4, 0], sizes = [1, 32], strides = [1, 1]} : vector<17x64xf32> to vector<1x32xf32>
    %123 = vector.broadcast %122 : vector<1x32xf32> to vector<16x32xf32>
    %124 = arith.addf %121, %123 : vector<16x32xf32>
    %c0_53 = arith.constant 0 : index
    %c0_54 = arith.constant 0 : index
    %125 = vector.load %arg5[%c0_53, %c0_54] : memref<16x8xf32, #tpu.memory_space<vmem>>, vector<16x8xf32>
    %c0_55 = arith.constant 0 : index
    %c0_56 = arith.constant 0 : index
    %126 = vector.load %arg15[%c0_55, %c0_56] : memref<8x32xf32, #tpu.memory_space<vmem>>, vector<8x32xf32>
    %cst_57 = arith.constant dense<0.000000e+00> : vector<16x32xf32>
    %127 = tpu.matmul %125, %126, %cst_57 {dimension_numbers = #tpu.dot_dimension_numbers<[1], [0], [0], [1], [0, 0, 1, 1], [], []>} : vector<16x8xf32>, vector<8x32xf32>, vector<16x32xf32> -> vector<16x32xf32>
    %128 = vector.extract_strided_slice %0 {offsets = [5, 0], sizes = [1, 32], strides = [1, 1]} : vector<17x64xf32> to vector<1x32xf32>
    %129 = vector.broadcast %128 : vector<1x32xf32> to vector<16x32xf32>
    %130 = arith.addf %127, %129 : vector<16x32xf32>
    %131 = vector.extract_strided_slice %0 {offsets = [6, 0], sizes = [1, 32], strides = [1, 1]} : vector<17x64xf32> to vector<1x32xf32>
    %132 = vector.extract_strided_slice %0 {offsets = [7, 0], sizes = [1, 32], strides = [1, 1]} : vector<17x64xf32> to vector<1x32xf32>
    %cst_58 = arith.constant dense<0.000000e+00> : vector<16xf32>
    %133 = vector.multi_reduction <add>, %130, %cst_58 [1] : vector<16x32xf32> to vector<16xf32>
    %134 = vector.shape_cast %133 : vector<16xf32> to vector<16x1xf32>
    %cst_59 = arith.constant 3.200000e+01 : f32
    %135 = vector.broadcast %cst_59 : f32 to vector<16x1xf32>
    %136 = arith.divf %134, %135 : vector<16x1xf32>
    %137 = vector.broadcast %136 : vector<16x1xf32> to vector<16x32xf32>
    %138 = arith.subf %130, %137 : vector<16x32xf32>
    %139 = arith.mulf %138, %138 : vector<16x32xf32>
    %cst_60 = arith.constant dense<0.000000e+00> : vector<16xf32>
    %140 = vector.multi_reduction <add>, %139, %cst_60 [1] : vector<16x32xf32> to vector<16xf32>
    %141 = vector.shape_cast %140 : vector<16xf32> to vector<16x1xf32>
    %cst_61 = arith.constant 3.200000e+01 : f32
    %142 = vector.broadcast %cst_61 : f32 to vector<16x1xf32>
    %143 = arith.divf %141, %142 : vector<16x1xf32>
    %cst_62 = arith.constant 9.99999974E-6 : f32
    %144 = vector.broadcast %cst_62 : f32 to vector<16x1xf32>
    %145 = arith.addf %143, %144 : vector<16x1xf32>
    %146 = math.rsqrt %145 : vector<16x1xf32>
    %147 = vector.broadcast %146 : vector<16x1xf32> to vector<16x32xf32>
    %148 = arith.mulf %138, %147 : vector<16x32xf32>
    %149 = vector.broadcast %131 : vector<1x32xf32> to vector<16x32xf32>
    %150 = arith.mulf %148, %149 : vector<16x32xf32>
    %151 = vector.broadcast %132 : vector<1x32xf32> to vector<16x32xf32>
    %152 = arith.addf %150, %151 : vector<16x32xf32>
    %cst_63 = arith.constant 0.000000e+00 : f32
    %153 = vector.broadcast %cst_63 : f32 to vector<16x32xf32>
    %154 = arith.maximumf %152, %153 : vector<16x32xf32>
    %c0_64 = arith.constant 0 : index
    %c0_65 = arith.constant 0 : index
    %155 = vector.load %arg16[%c0_64, %c0_65] : memref<32x32xf32, #tpu.memory_space<vmem>>, vector<32x32xf32>
    %cst_66 = arith.constant dense<0.000000e+00> : vector<16x32xf32>
    %156 = tpu.matmul %154, %155, %cst_66 {dimension_numbers = #tpu.dot_dimension_numbers<[1], [0], [0], [1], [0, 0, 1, 1], [], []>} : vector<16x32xf32>, vector<32x32xf32>, vector<16x32xf32> -> vector<16x32xf32>
    %157 = vector.extract_strided_slice %0 {offsets = [8, 0], sizes = [1, 32], strides = [1, 1]} : vector<17x64xf32> to vector<1x32xf32>
    %158 = vector.broadcast %157 : vector<1x32xf32> to vector<16x32xf32>
    %159 = arith.addf %156, %158 : vector<16x32xf32>
    %160 = vector.extract_strided_slice %0 {offsets = [9, 0], sizes = [1, 32], strides = [1, 1]} : vector<17x64xf32> to vector<1x32xf32>
    %161 = vector.extract_strided_slice %0 {offsets = [10, 0], sizes = [1, 32], strides = [1, 1]} : vector<17x64xf32> to vector<1x32xf32>
    %cst_67 = arith.constant dense<0.000000e+00> : vector<16xf32>
    %162 = vector.multi_reduction <add>, %159, %cst_67 [1] : vector<16x32xf32> to vector<16xf32>
    %163 = vector.shape_cast %162 : vector<16xf32> to vector<16x1xf32>
    %cst_68 = arith.constant 3.200000e+01 : f32
    %164 = vector.broadcast %cst_68 : f32 to vector<16x1xf32>
    %165 = arith.divf %163, %164 : vector<16x1xf32>
    %166 = vector.broadcast %165 : vector<16x1xf32> to vector<16x32xf32>
    %167 = arith.subf %159, %166 : vector<16x32xf32>
    %168 = arith.mulf %167, %167 : vector<16x32xf32>
    %cst_69 = arith.constant dense<0.000000e+00> : vector<16xf32>
    %169 = vector.multi_reduction <add>, %168, %cst_69 [1] : vector<16x32xf32> to vector<16xf32>
    %170 = vector.shape_cast %169 : vector<16xf32> to vector<16x1xf32>
    %cst_70 = arith.constant 3.200000e+01 : f32
    %171 = vector.broadcast %cst_70 : f32 to vector<16x1xf32>
    %172 = arith.divf %170, %171 : vector<16x1xf32>
    %cst_71 = arith.constant 9.99999974E-6 : f32
    %173 = vector.broadcast %cst_71 : f32 to vector<16x1xf32>
    %174 = arith.addf %172, %173 : vector<16x1xf32>
    %175 = math.rsqrt %174 : vector<16x1xf32>
    %176 = vector.broadcast %175 : vector<16x1xf32> to vector<16x32xf32>
    %177 = arith.mulf %167, %176 : vector<16x32xf32>
    %178 = vector.broadcast %160 : vector<1x32xf32> to vector<16x32xf32>
    %179 = arith.mulf %177, %178 : vector<16x32xf32>
    %180 = vector.broadcast %161 : vector<1x32xf32> to vector<16x32xf32>
    %181 = arith.addf %179, %180 : vector<16x32xf32>
    %cst_72 = arith.constant 0.000000e+00 : f32
    %182 = vector.broadcast %cst_72 : f32 to vector<16x32xf32>
    %183 = arith.maximumf %181, %182 : vector<16x32xf32>
    %184 = arith.addf %124, %183 : vector<16x32xf32>
    %185 = arith.addf %184, %100 : vector<16x32xf32>
    %186 = arith.addf %100, %185 : vector<16x32xf32>
    %187 = vector.extract_strided_slice %0 {offsets = [11, 0], sizes = [1, 32], strides = [1, 1]} : vector<17x64xf32> to vector<1x32xf32>
    %188 = vector.extract_strided_slice %0 {offsets = [12, 0], sizes = [1, 32], strides = [1, 1]} : vector<17x64xf32> to vector<1x32xf32>
    %cst_73 = arith.constant dense<0.000000e+00> : vector<16xf32>
    %189 = vector.multi_reduction <add>, %186, %cst_73 [1] : vector<16x32xf32> to vector<16xf32>
    %190 = vector.shape_cast %189 : vector<16xf32> to vector<16x1xf32>
    %cst_74 = arith.constant 3.200000e+01 : f32
    %191 = vector.broadcast %cst_74 : f32 to vector<16x1xf32>
    %192 = arith.divf %190, %191 : vector<16x1xf32>
    %193 = vector.broadcast %192 : vector<16x1xf32> to vector<16x32xf32>
    %194 = arith.subf %186, %193 : vector<16x32xf32>
    %195 = arith.mulf %194, %194 : vector<16x32xf32>
    %cst_75 = arith.constant dense<0.000000e+00> : vector<16xf32>
    %196 = vector.multi_reduction <add>, %195, %cst_75 [1] : vector<16x32xf32> to vector<16xf32>
    %197 = vector.shape_cast %196 : vector<16xf32> to vector<16x1xf32>
    %cst_76 = arith.constant 3.200000e+01 : f32
    %198 = vector.broadcast %cst_76 : f32 to vector<16x1xf32>
    %199 = arith.divf %197, %198 : vector<16x1xf32>
    %cst_77 = arith.constant 9.99999974E-6 : f32
    %200 = vector.broadcast %cst_77 : f32 to vector<16x1xf32>
    %201 = arith.addf %199, %200 : vector<16x1xf32>
    %202 = math.rsqrt %201 : vector<16x1xf32>
    %203 = vector.broadcast %202 : vector<16x1xf32> to vector<16x32xf32>
    %204 = arith.mulf %194, %203 : vector<16x32xf32>
    %205 = vector.broadcast %187 : vector<1x32xf32> to vector<16x32xf32>
    %206 = arith.mulf %204, %205 : vector<16x32xf32>
    %207 = vector.broadcast %188 : vector<1x32xf32> to vector<16x32xf32>
    %208 = arith.addf %206, %207 : vector<16x32xf32>
    %c0_78 = arith.constant 0 : index
    %c0_79 = arith.constant 0 : index
    %209 = vector.load %arg17[%c0_78, %c0_79] : memref<32x64xf32, #tpu.memory_space<vmem>>, vector<32x64xf32>
    %cst_80 = arith.constant dense<0.000000e+00> : vector<16x64xf32>
    %210 = tpu.matmul %208, %209, %cst_80 {dimension_numbers = #tpu.dot_dimension_numbers<[1], [0], [0], [1], [0, 0, 1, 1], [], []>} : vector<16x32xf32>, vector<32x64xf32>, vector<16x64xf32> -> vector<16x64xf32>
    %211 = vector.extract_strided_slice %0 {offsets = [13, 0], sizes = [1, 64], strides = [1, 1]} : vector<17x64xf32> to vector<1x64xf32>
    %212 = vector.broadcast %211 : vector<1x64xf32> to vector<16x64xf32>
    %213 = arith.addf %210, %212 : vector<16x64xf32>
    %cst_81 = arith.constant 0.000000e+00 : f32
    %214 = vector.broadcast %cst_81 : f32 to vector<16x64xf32>
    %215 = arith.maximumf %213, %214 : vector<16x64xf32>
    %c0_82 = arith.constant 0 : index
    %c0_83 = arith.constant 0 : index
    %216 = vector.load %arg18[%c0_82, %c0_83] : memref<64x32xf32, #tpu.memory_space<vmem>>, vector<64x32xf32>
    %cst_84 = arith.constant dense<0.000000e+00> : vector<16x32xf32>
    %217 = tpu.matmul %215, %216, %cst_84 {dimension_numbers = #tpu.dot_dimension_numbers<[1], [0], [0], [1], [0, 0, 1, 1], [], []>} : vector<16x64xf32>, vector<64x32xf32>, vector<16x32xf32> -> vector<16x32xf32>
    %218 = vector.extract_strided_slice %0 {offsets = [14, 0], sizes = [1, 32], strides = [1, 1]} : vector<17x64xf32> to vector<1x32xf32>
    %219 = vector.broadcast %218 : vector<1x32xf32> to vector<16x32xf32>
    %220 = arith.addf %217, %219 : vector<16x32xf32>
    %221 = arith.addf %208, %220 : vector<16x32xf32>
    %222 = vector.extract_strided_slice %0 {offsets = [15, 0], sizes = [1, 32], strides = [1, 1]} : vector<17x64xf32> to vector<1x32xf32>
    %223 = vector.extract_strided_slice %0 {offsets = [16, 0], sizes = [1, 32], strides = [1, 1]} : vector<17x64xf32> to vector<1x32xf32>
    %cst_85 = arith.constant dense<0.000000e+00> : vector<16xf32>
    %224 = vector.multi_reduction <add>, %221, %cst_85 [1] : vector<16x32xf32> to vector<16xf32>
    %225 = vector.shape_cast %224 : vector<16xf32> to vector<16x1xf32>
    %cst_86 = arith.constant 3.200000e+01 : f32
    %226 = vector.broadcast %cst_86 : f32 to vector<16x1xf32>
    %227 = arith.divf %225, %226 : vector<16x1xf32>
    %228 = vector.broadcast %227 : vector<16x1xf32> to vector<16x32xf32>
    %229 = arith.subf %221, %228 : vector<16x32xf32>
    %230 = arith.mulf %229, %229 : vector<16x32xf32>
    %cst_87 = arith.constant dense<0.000000e+00> : vector<16xf32>
    %231 = vector.multi_reduction <add>, %230, %cst_87 [1] : vector<16x32xf32> to vector<16xf32>
    %232 = vector.shape_cast %231 : vector<16xf32> to vector<16x1xf32>
    %cst_88 = arith.constant 3.200000e+01 : f32
    %233 = vector.broadcast %cst_88 : f32 to vector<16x1xf32>
    %234 = arith.divf %232, %233 : vector<16x1xf32>
    %cst_89 = arith.constant 9.99999974E-6 : f32
    %235 = vector.broadcast %cst_89 : f32 to vector<16x1xf32>
    %236 = arith.addf %234, %235 : vector<16x1xf32>
    %237 = math.rsqrt %236 : vector<16x1xf32>
    %238 = vector.broadcast %237 : vector<16x1xf32> to vector<16x32xf32>
    %239 = arith.mulf %229, %238 : vector<16x32xf32>
    %240 = vector.broadcast %222 : vector<1x32xf32> to vector<16x32xf32>
    %241 = arith.mulf %239, %240 : vector<16x32xf32>
    %242 = vector.broadcast %223 : vector<1x32xf32> to vector<16x32xf32>
    %243 = arith.addf %241, %242 : vector<16x32xf32>
    %c0_90 = arith.constant 0 : index
    %c0_91 = arith.constant 0 : index
    %244 = vector.load %arg20[%c0_90, %c0_91] : memref<16x32xf32, #tpu.memory_space<vmem>>, vector<16x32xf32>
    tpu.vector_store %arg20[%c0_90, %c0_91], %243 {strides = array<i32>} : memref<16x32xf32, #tpu.memory_space<vmem>>, vector<16x32xf32>,
    return
  }
  func.func @transform_0(%arg0: i32) -> (i32, i32) {
    %c0_i32 = arith.constant 0 : i32
    %c0_i32_0 = arith.constant 0 : i32
    %c0_i32_1 = arith.constant 0 : i32
    return %c0_i32, %c0_i32_0 : i32, i32
  }
  func.func @transform_1(%arg0: i32) -> (i32, i32) {
    %c0_i32 = arith.constant 0 : i32
    %c0_i32_0 = arith.constant 0 : i32
    %c0_i32_1 = arith.constant 0 : i32
    return %c0_i32, %c0_i32_0 : i32, i32
  }
  func.func @transform_2(%arg0: i32) -> (i32, i32, i32) {
    %c0_i32 = arith.constant 0 : i32
    %c0_i32_0 = arith.constant 0 : i32
    %c0_i32_1 = arith.constant 0 : i32
    %c0_i32_2 = arith.constant 0 : i32
    return %c0_i32, %c0_i32_0, %c0_i32_1 : i32, i32, i32
  }
  func.func @transform_3(%arg0: i32) -> (i32, i32) {
    %c0_i32 = arith.constant 0 : i32
    %c0_i32_0 = arith.constant 0 : i32
    %c0_i32_1 = arith.constant 0 : i32
    return %c0_i32, %c0_i32_0 : i32, i32
  }
  func.func @transform_4(%arg0: i32) -> (i32, i32) {
    %c0_i32 = arith.constant 0 : i32
    %c0_i32_0 = arith.constant 0 : i32
    %c0_i32_1 = arith.constant 0 : i32
    return %c0_i32, %c0_i32_0 : i32, i32
  }
  func.func @transform_5(%arg0: i32) -> (i32, i32, i32) {
    %c0_i32 = arith.constant 0 : i32
    %c0_i32_0 = arith.constant 0 : i32
    %c0_i32_1 = arith.constant 0 : i32
    %c0_i32_2 = arith.constant 0 : i32
    return %c0_i32, %c0_i32_0, %c0_i32_1 : i32, i32, i32
  }
  func.func @transform_6(%arg0: i32) -> (i32, i32, i32) {
    %c0_i32 = arith.constant 0 : i32
    %c0_i32_0 = arith.constant 0 : i32
    %c0_i32_1 = arith.constant 0 : i32
    %c0_i32_2 = arith.constant 0 : i32
    return %c0_i32, %c0_i32_0, %c0_i32_1 : i32, i32, i32
  }
  func.func @transform_7(%arg0: i32) -> (i32, i32, i32) {
    %c0_i32 = arith.constant 0 : i32
    %c0_i32_0 = arith.constant 0 : i32
    %c0_i32_1 = arith.constant 0 : i32
    %c0_i32_2 = arith.constant 0 : i32
    return %c0_i32, %c0_i32_0, %c0_i32_1 : i32, i32, i32
  }
  func.func @transform_8(%arg0: i32) -> (i32, i32, i32) {
    %c0_i32 = arith.constant 0 : i32
    %c0_i32_0 = arith.constant 0 : i32
    %c0_i32_1 = arith.constant 0 : i32
    %c0_i32_2 = arith.constant 0 : i32
    return %c0_i32, %c0_i32_0, %c0_i32_1 : i32, i32, i32
  }
  func.func @transform_9(%arg0: i32) -> (i32, i32, i32) {
    %c0_i32 = arith.constant 0 : i32
    %c0_i32_0 = arith.constant 0 : i32
    %c0_i32_1 = arith.constant 0 : i32
    %c0_i32_2 = arith.constant 0 : i32
    return %c0_i32, %c0_i32_0, %c0_i32_1 : i32, i32, i32
  }
  func.func @transform_10(%arg0: i32) -> (i32, i32, i32) {
    %c0_i32 = arith.constant 0 : i32
    %c0_i32_0 = arith.constant 0 : i32
    %c0_i32_1 = arith.constant 0 : i32
    %c0_i32_2 = arith.constant 0 : i32
    return %c0_i32, %c0_i32_0, %c0_i32_1 : i32, i32, i32
  }
  func.func @transform_11(%arg0: i32) -> (i32, i32, i32) {
    %c0_i32 = arith.constant 0 : i32
    %c0_i32_0 = arith.constant 0 : i32
    %c0_i32_1 = arith.constant 0 : i32
    %c0_i32_2 = arith.constant 0 : i32
    return %c0_i32, %c0_i32_0, %c0_i32_1 : i32, i32, i32
  }
  func.func @transform_12(%arg0: i32) -> (i32, i32) {
    %c0_i32 = arith.constant 0 : i32
    %c0_i32_0 = arith.constant 0 : i32
    %c0_i32_1 = arith.constant 0 : i32
    return %c0_i32, %c0_i32_0 : i32, i32
  }
  func.func @transform_13(%arg0: i32) -> (i32, i32) {
    %c0_i32 = arith.constant 0 : i32
    %c0_i32_0 = arith.constant 0 : i32
    %c0_i32_1 = arith.constant 0 : i32
    return %c0_i32, %c0_i32_0 : i32, i32
  }
  func.func @transform_14(%arg0: i32) -> (i32, i32) {
    %c0_i32 = arith.constant 0 : i32
    %c0_i32_0 = arith.constant 0 : i32
    %c0_i32_1 = arith.constant 0 : i32
    return %c0_i32, %c0_i32_0 : i32, i32
  }
  func.func @transform_15(%arg0: i32) -> (i32, i32) {
    %c0_i32 = arith.constant 0 : i32
    %c0_i32_0 = arith.constant 0 : i32
    %c0_i32_1 = arith.constant 0 : i32
    return %c0_i32, %c0_i32_0 : i32, i32
  }
  func.func @transform_16(%arg0: i32) -> (i32, i32) {
    %c0_i32 = arith.constant 0 : i32
    %c0_i32_0 = arith.constant 0 : i32
    %c0_i32_1 = arith.constant 0 : i32
    return %c0_i32, %c0_i32_0 : i32, i32
  }
  func.func @transform_17(%arg0: i32) -> (i32, i32) {
    %c0_i32 = arith.constant 0 : i32
    %c0_i32_0 = arith.constant 0 : i32
    %c0_i32_1 = arith.constant 0 : i32
    return %c0_i32, %c0_i32_0 : i32, i32
  }
  func.func @transform_18(%arg0: i32) -> (i32, i32) {
    %c0_i32 = arith.constant 0 : i32
    %c0_i32_0 = arith.constant 0 : i32
    %c0_i32_1 = arith.constant 0 : i32
    return %c0_i32, %c0_i32_0 : i32, i32
  }
  func.func @transform_19(%arg0: i32) -> (i32, i32) {
    %c0_i32 = arith.constant 0 : i32
    %c0_i32_0 = arith.constant 0 : i32
    %c0_i32_1 = arith.constant 0 : i32
    return %c0_i32, %c0_i32_0 : i32, i32
  }
}

</mosaic_0001>

<bundles_post_ra>
// kernel: tpu_custom_call.1
= control target key start
LH: loop header
LB: loop body
LE: loop exit
PB: predicated region body
PF: predicated region fallthrough
CT: control target
= control target key end

     0   :  { %s7075_s0 = inlined_call_operand.vmem [shape: f32[16,32], index: 0, kind: input, shape index: {}]   ;;  %s7076_s1 = inlined_call_operand.vmem [shape: f32[16,32], index: 1, kind: input, shape index: {}]   ;;  %s7077_s2 = inlined_call_operand.vmem [shape: f32[32,4,16], index: 2, kind: input, shape index: {}]   ;;  %s7078_s3 = inlined_call_operand.vmem [shape: f32[4,16], index: 3, kind: input, shape index: {}]   ;;  %s7079_s4 = inlined_call_operand.vmem [shape: f32[16,8], index: 4, kind: input, shape index: {}]   ;;  %s7080_s5 = inlined_call_operand.vmem [shape: f32[4,32,8], index: 5, kind: input, shape index: {}]   ;;  %s7081_s6 = inlined_call_operand.vmem [shape: f32[4,32,8], index: 6, kind: input, shape index: {}]   ;;  %s7082_s7 = inlined_call_operand.vmem [shape: f32[4,32,8], index: 7, kind: input, shape index: {}]   ;;  %s7083_s8 = inlined_call_operand.vmem [shape: f32[4,1,8], index: 8, kind: input, shape index: {}]   ;;  %s7084_s9 = inlined_call_operand.vmem [shape: f32[4,1,8], index: 9, kind: input, shape index: {}]   ;;  %s7085_s10 = inlined_call_operand.vmem [shape: f32[4,1,8], index: 10, kind: input, shape index: {}]   ;;  %s7086_s11 = inlined_call_operand.vmem [shape: f32[4,8,32], index: 11, kind: input, shape index: {}]   ;;  %s7087_s12 = inlined_call_operand.vmem [shape: f32[32,4], index: 12, kind: input, shape index: {}]   ;;  %s7088_s13 = inlined_call_operand.vmem [shape: f32[32,32], index: 13, kind: input, shape index: {}]   ;;  %s7089_s14 = inlined_call_operand.vmem [shape: f32[8,32], index: 14, kind: input, shape index: {}]   ;;  %s7090_s15 = inlined_call_operand.vmem [shape: f32[32,32], index: 15, kind: input, shape index: {}]   ;;  %s7091_s16 = inlined_call_operand.vmem [shape: f32[32,64], index: 16, kind: input, shape index: {}]   ;;  %s7092_s17 = inlined_call_operand.vmem [shape: f32[64,32], index: 17, kind: input, shape index: {}]   ;;  %s7093_s18 = inlined_call_operand.vmem [shape: f32[17,64], index: 18, kind: input, shape index: {}]   ;;  %s7094_s19 = inlined_call_operand.hbm [shape: f32[16,32], index: 19, kind: output, shape index: {}]  }
   0x1   :  { %7098 = sst [smem:[#allocation5_spill]] %s7075_s0 }
   0x2   :  { %7099 = sst [smem:[#allocation6_spill]] %s7076_s1 }
   0x3   :  { %7100 = sst [smem:[#allocation7_spill]] %s7077_s2 }
   0x4   :  { %7101 = sst [smem:[#allocation8_spill]] %s7078_s3 }
   0x5   :  { %v72_v0 = vld [vmem:[%s7080_s5] sm:$0xff]  ;;  %v73_v1 = vld [vmem:[%s7080_s5 + $0x8] sm:$0xff]  ;;  %v6024_v3 = vmov 0.0|0.0   ;;  %v74_v6 = vld [vmem:[%s7080_s5 + $0x10] sm:$0xff]  ;;  %vm6025_vm0 = vmmov 0   ;;  %v6026_v11 = vmov 0.0  }
   0x6   :  { %v84_v2 = vld [vmem:[%s7080_s5 + $0x60] sm:$0xff]  ;;  %5737 = vmatprep.subr.bf16.mxu0 %v6024_v3  ;;  %5755 = vmatprep.subr.bf16.mxu1 %v6024_v3  ;;  %v6141_v4 = vpack.c.bf16 %v73_v1, %v72_v0  ;;  %v85_v5 = vld [vmem:[%s7080_s5 + $0x68] sm:$0xff]  ;;  %v75_v7 = vld [vmem:[%s7080_s5 + $0x18] sm:$0xff]  ;;  %s7102_s21 = sld [smem:[#allocation5_spill]]  ;;  %s7103_s2 = sld [smem:[#allocation6_spill]]  ;;  %vm116_vm1 = vcmask 261120  }
   0x7   :  { %v5756_v8 = vpack.c.bf16 %v85_v5, %v84_v2  ;;  %v86_v9 = vld [vmem:[%s7080_s5 + $0x70] sm:$0xff]  ;;  %v87_v10 = vld [vmem:[%s7080_s5 + $0x78] sm:$0xff]  ;;  %5293 = vmatprep.mubr.msk.f32.mxu0 %vm6025_vm0, %v6026_v11  ;;  %5326 = vmatprep.mubr.msk.f32.mxu1 %vm6025_vm0, %v6026_v11  ;;  %v6163_v12 = vpack.c.bf16 %v75_v7, %v74_v6  ;;  %v76_v16 = vld [vmem:[%s7080_s5 + $0x20] sm:$0xff] }
   0x8   :  { %5739 = vmatpush3.bf16.msra.mxu0 %v6141_v4  ;;  %v5759_v15 = vpack.c.bf16 %v87_v10, %v86_v9  ;;  %v77_v17 = vld [vmem:[%s7080_s5 + $0x28] sm:$0xff]  ;;  %v78_v20 = vld [vmem:[%s7080_s5 + $0x30] sm:$0xff]  ;;  %v79_v21 = vld [vmem:[%s7080_s5 + $0x38] sm:$0xff] }
   0x9   :  { %5757 = vmatpush3.bf16.msra.mxu1 %v5756_v8  ;;  %5740 = vmatprep.subr.bf16.mxu0 %v6024_v3  ;;  %v5744_v19 = vpack.c.bf16 %v77_v17, %v76_v16  ;;  %v5747_v22 = vpack.c.bf16 %v79_v21, %v78_v20  ;;  %v80_v23 = vld [vmem:[%s7080_s5 + $0x40] sm:$0xff]  ;;  %v81_v24 = vld [vmem:[%s7080_s5 + $0x48] sm:$0xff] }
   0xa   :  { %5758 = vmatprep.subr.bf16.mxu1 %v6024_v3 }
   0xc   :  { %v6168_v13 = vld [vmem:[%s7102_s21] sm:$0xff]  ;;  %5742 = vmatpush3.bf16.msra.mxu0 %v6163_v12  ;;  %v6207_v25 = vld [vmem:[%s7102_s21 + $0x8] sm:$0xff] }
   0xd   :  { %v68_v14 = vld [vmem:[%s7103_s2] sm:$0xff]  ;;  %5760 = vmatpush3.bf16.msra.mxu1 %v5759_v15  ;;  %5743 = vmatprep.subr.bf16.mxu0 %v6024_v3  ;;  %v69_v26 = vld [vmem:[%s7103_s2 + $0x8] sm:$0xff] }
   0xe   :  { %v6182_v18 = vadd.f32 %v68_v14, %v6168_v13  ;;  %5767 = vmatprep.subr.bf16.mxu1 %v6024_v3 }
  0x10   :  { %5294 = vmatmul.mubr.msk.f32.vlgmr.msra.gmra.mrb[0].mxu0 %vm116_vm1, %v6182_v18  ;;  %5327 = vmatmul.mubr.msk.f32.vlgmr.msra.gmra.mrb[0].mxu1 %vm116_vm1, %v6182_v18 }
  0x11   :  { %5745 = vmatpush3.bf16.msra.mxu0 %v5744_v19  ;;  %5769 = vmatpush3.bf16.msra.mxu1 %v5744_v19 }
  0x12   :  { %5746 = vmatprep.subr.bf16.mxu0 %v6024_v3  ;;  %5770 = vmatprep.subr.bf16.mxu1 %v6024_v3 }
  0x13   :  { %5304 = vmatprep.mubr.msk.f32.mxu0 %vm6025_vm0, %v6026_v11  ;;  %5348 = vmatprep.mubr.msk.f32.mxu1 %vm6025_vm0, %v6026_v11 }
  0x14   :  { %24 = vsyncpa [#allocation3], 0  ;;  %v5750_v27 = vpack.c.bf16 %v81_v24, %v80_v23  ;;  %v6218_v28 = vadd.f32 %v69_v26, %v6207_v25  ;;  %v82_v29 = vld [vmem:[%s7080_s5 + $0x50] sm:$0xff]  ;;  %v83_v30 = vld [vmem:[%s7080_s5 + $0x58] sm:$0xff]  ;;  %vm1905_vm2 = vcmask 64512   ;;  %s7104_s30 = sld [smem:[#allocation8_spill]] }
  0x15   :  { %5748 = vmatpush3.bf16.msra.mxu0 %v5747_v22  ;;  %5772 = vmatpush3.bf16.msra.mxu1 %v5747_v22  ;;  %v5753_v31 = vpack.c.bf16 %v83_v30, %v82_v29  ;;  %v687_v32 = vld [vmem:[%s7081_s6 + $0x20] sm:$0xff]  ;;  %v688_v33 = vld [vmem:[%s7081_s6 + $0x28] sm:$0xff]  ;;  %v689_v35 = vld [vmem:[%s7081_s6 + $0x30] sm:$0xff]  ;;  %vm4036_vm3 = vcmask 125952   ;;  %vm4293_vm4 = vcmask 1041409   ;;  %vm4295_vm5 = vcmask 1042434  }
  0x16   :  { %5749 = vmatprep.subr.bf16.mxu0 %v6024_v3  ;;  %5779 = vmatprep.subr.bf16.mxu1 %v6024_v3  ;;  %v5792_v34 = vpack.c.bf16 %v688_v33, %v687_v32  ;;  %v690_v36 = vld [vmem:[%s7081_s6 + $0x38] sm:$0xff]  ;;  %v695_v38 = vld [vmem:[%s7081_s6 + $0x60] sm:$0xff]  ;;  %v696_v39 = vld [vmem:[%s7081_s6 + $0x68] sm:$0xff]  ;;  %vm4297_vm6 = vcmask 1043459   ;;  %vm4299_vm7 = vcmask 1044484   ;;  %vm4301_vm8 = vcmask 1045509  }
  0x17   :  { %v5795_v37 = vpack.c.bf16 %v690_v36, %v689_v35  ;;  %v5804_v40 = vpack.c.bf16 %v696_v39, %v695_v38  ;;  %v697_v41 = vld [vmem:[%s7081_s6 + $0x70] sm:$0xff]  ;;  %v698_v42 = vld [vmem:[%s7081_s6 + $0x78] sm:$0xff]  ;;  %v683_v44 = vld [vmem:[%s7081_s6] sm:$0xff]  ;;  %vm4303_vm9 = vcmask 1046534   ;;  %vm4305_vm10 = vcmask 1047559   ;;  %s6027_s22 = smov [#allocation2]  }
  0x18   :  { %5305 = vmatmul.mubr.msk.f32.vlgmr.msra.gmra.mrb[2].mxu0 %vm116_vm1, %v6182_v18  ;;  %5349 = vmatmul.mubr.msk.f32.vlgmr.msra.gmra.mrb[2].mxu1 %vm116_vm1, %v6218_v28  ;;  %v5807_v43 = vpack.c.bf16 %v698_v42, %v697_v41  ;;  %v684_v45 = vld [vmem:[%s7081_s6 + $0x8] sm:$0xff]  ;;  %v685_v47 = vld [vmem:[%s7081_s6 + $0x10] sm:$0xff]  ;;  %v686_v48 = vld [vmem:[%s7081_s6 + $0x18] sm:$0xff]  ;;  %vm4857_vm11 = vcmask 523264   ;;  %s4986_s23 = sshll.u32 %s6027_s22, 4  ;;  %s4987_s23 = int_to_ptr.vmem [resolvable:$true] %s4986_s23 }
  0x19   :  { %5751 = vmatpush3.bf16.msra.mxu0 %v5750_v27  ;;  %5781 = vmatpush3.bf16.msra.mxu1 %v5756_v8  ;;  %v5786_v46 = vpack.c.bf16 %v684_v45, %v683_v44  ;;  %v5789_v49 = vpack.c.bf16 %v686_v48, %v685_v47  ;;  %v691_v50 = vld [vmem:[%s7081_s6 + $0x40] sm:$0xff]  ;;  %v692_v51 = vld [vmem:[%s7081_s6 + $0x48] sm:$0xff]  ;;  %v693_v53 = vld [vmem:[%s7081_s6 + $0x50] sm:$0xff]  ;;  %s6000_s24 = scalar_lea.vmem %s4987_s23, 256  ;;  %p6005_p1 = scmp.lt.s32.totalorder %s4987_s23, %s4987_s23 }
  0x1a   :  { %5752 = vmatprep.subr.bf16.mxu0 %v6024_v3  ;;  %5782 = vmatprep.subr.bf16.mxu1 %v6024_v3  ;;  %v5798_v52 = vpack.c.bf16 %v692_v51, %v691_v50  ;;  %v694_v54 = vld [vmem:[%s7081_s6 + $0x58] sm:$0xff]  ;;  %v1291_v56 = vld [vmem:[%s7082_s7 + $0x20] sm:$0xff]  ;;  %v1292_v57 = vld [vmem:[%s7082_s7 + $0x28] sm:$0xff]  ;;  %p6001_p0 = scmp.ne.s32.totalorder %s4987_s23, %s6000_s24  ;;  %p6006_p2 = scmp.lt.s32.totalorder %s6000_s24, %s6000_s24 }
  0x1b   :  { %5315 = vmatprep.mubr.msk.f32.mxu0 %vm6025_vm0, %v6026_v11  ;;  %5370 = vmatprep.mubr.msk.f32.mxu1 %vm6025_vm0, %v6026_v11  ;;  %v5801_v55 = vpack.c.bf16 %v694_v54, %v693_v53  ;;  %v5840_v58 = vpack.c.bf16 %v1292_v57, %v1291_v56  ;;  %v1293_v59 = vld [vmem:[%s7082_s7 + $0x30] sm:$0xff]  ;;  %v1294_v60 = vld [vmem:[%s7082_s7 + $0x38] sm:$0xff]  ;;  %v1299_v62 = vld [vmem:[%s7082_s7 + $0x60] sm:$0xff] }
  0x1c   :  { %v5843_v61 = vpack.c.bf16 %v1294_v60, %v1293_v59  ;;  %v1300_v63 = vld [vmem:[%s7082_s7 + $0x68] sm:$0xff]  ;;  %v1301_v1 = vld [vmem:[%s7082_s7 + $0x70] sm:$0xff]  ;;  %v1302_v2 = vld [vmem:[%s7082_s7 + $0x78] sm:$0xff]  ;;  %p6007_p3 = por %p6006_p2, %p6005_p1 }
  0x1d   :  { %5754 = vmatpush3.bf16.msra.mxu0 %v5753_v31  ;;  %5784 = vmatpush3.bf16.msra.mxu1 %v5759_v15  ;;  %v5852_v0 = vpack.c.bf16 %v1300_v63, %v1299_v62  ;;  %v1287_v5 = vld [vmem:[%s7082_s7] sm:$0xff]  ;;  %v1288_v6 = vld [vmem:[%s7082_s7 + $0x8] sm:$0xff]  ;;  %v1289_v8 = vld [vmem:[%s7082_s7 + $0x10] sm:$0xff] }
  0x1e   :  { %5761 = vmatprep.subr.bf16.mxu0 %v6024_v3  ;;  %5791 = vmatprep.subr.bf16.mxu1 %v6024_v3  ;;  %v5834_v7 = vpack.c.bf16 %v1288_v6, %v1287_v5  ;;  %v1290_v9 = vld [vmem:[%s7082_s7 + $0x18] sm:$0xff]  ;;  %v1296_v14 = vld [vmem:[%s7082_s7 + $0x48] sm:$0xff]  ;;  %v1297_v16 = vld [vmem:[%s7082_s7 + $0x50] sm:$0xff]  ;;  %p6008_p4 = pnand %p6007_p3, %p6001_p0 }
  0x1f   :  { %v5837_v10 = vpack.c.bf16 %v1290_v9, %v1289_v8  ;;  %v1298_v17 = vld [vmem:[%s7082_s7 + $0x58] sm:$0xff]  ;;  %v4998_v30 = vld [vmem:[%s7083_s8 + $0x1] ss:$0 sm:$0xff]  ;;  %v5000_v38 = vld [vmem:[%s7083_s8 + $0x3] ss:$0 sm:$0xff] }
  0x20   :  { %5316 = vmatmul.mubr.msk.f32.vlgmr.msra.gmra.mrb[4].mxu0 %vm116_vm1, %v6182_v18  ;;  %5371 = vmatmul.mubr.msk.f32.vlgmr.msra.gmra.mrb[4].mxu1 %vm116_vm1, %v6218_v28  ;;  %v5012_v39 = vld [vmem:[%s7084_s9 + $0x3] ss:$0 sm:$0xff]  ;;  %v5009_v48 = vld [vmem:[%s7084_s9] ss:$0 sm:$0xff]  ;;  %v5011_v60 = vld [vmem:[%s7084_s9 + $0x2] ss:$0 sm:$0xff] }
  0x21   :  { %5763 = vmatpush3.bf16.msra.mxu0 %v6141_v4  ;;  %5793 = vmatpush3.bf16.msra.mxu1 %v5792_v34  ;;  %v5855_v4 = vpack.c.bf16 %v1302_v2, %v1301_v1 }
  0x22   :  { %5764 = vmatprep.subr.bf16.mxu0 %v6024_v3  ;;  %5794 = vmatprep.subr.bf16.mxu1 %v6024_v3 }
  0x23   :  { %5337 = vmatprep.mubr.msk.f32.mxu0 %vm6025_vm0, %v6026_v11  ;;  %5392 = vmatprep.mubr.msk.f32.mxu1 %vm6025_vm0, %v6026_v11 }
  0x25   :  { %5766 = vmatpush3.bf16.msra.mxu0 %v6163_v12  ;;  %5796 = vmatpush3.bf16.msra.mxu1 %v5795_v37  ;;  %v1295_v12 = vld [vmem:[%s7082_s7 + $0x40] sm:$0xff] }
  0x26   :  { %5773 = vmatprep.subr.bf16.mxu0 %v6024_v3  ;;  %5803 = vmatprep.subr.bf16.mxu1 %v6024_v3  ;;  %v5846_v15 = vpack.c.bf16 %v1296_v14, %v1295_v12 }
  0x28   :  { %5338 = vmatmul.mubr.msk.f32.vlgmr.msra.gmra.mrb[6].mxu0 %vm116_vm1, %v6218_v28  ;;  %5393 = vmatmul.mubr.msk.f32.vlgmr.msra.gmra.mrb[6].mxu1 %vm116_vm1, %v6182_v18 }
  0x29   :  { %5775 = vmatpush3.bf16.msra.mxu0 %v5750_v27  ;;  %5805 = vmatpush3.bf16.msra.mxu1 %v5804_v40 }
  0x2a   :  { %5776 = vmatprep.subr.bf16.mxu0 %v6024_v3  ;;  %5806 = vmatprep.subr.bf16.mxu1 %v6024_v3 }
  0x2b   :  { %5359 = vmatprep.mubr.msk.f32.mxu0 %vm6025_vm0, %v6026_v11  ;;  %5414 = vmatprep.mubr.msk.f32.mxu1 %vm6025_vm0, %v6026_v11 }
  0x2d   :  { %5778 = vmatpush3.bf16.msra.mxu0 %v5753_v31  ;;  %5808 = vmatpush3.bf16.msra.mxu1 %v5807_v43 }
  0x2e   :  { %5785 = vmatprep.subr.bf16.mxu0 %v6024_v3  ;;  %5815 = vmatprep.subr.bf16.mxu1 %v6024_v3 }
  0x30   :  { %5360 = vmatmul.mubr.msk.f32.vlgmr.msra.gmra.mrb[8].mxu0 %vm116_vm1, %v6218_v28  ;;  %5415 = vmatmul.mubr.msk.f32.vlgmr.msra.gmra.mrb[8].mxu1 %vm116_vm1, %v6182_v18 }
  0x31   :  { %5787 = vmatpush3.bf16.msra.mxu0 %v5786_v46  ;;  %5817 = vmatpush3.bf16.msra.mxu1 %v5792_v34 }
  0x32   :  { %5788 = vmatprep.subr.bf16.mxu0 %v6024_v3  ;;  %5818 = vmatprep.subr.bf16.mxu1 %v6024_v3 }
  0x33   :  { %5381 = vmatprep.mubr.msk.f32.mxu0 %vm6025_vm0, %v6026_v11  ;;  %5436 = vmatprep.mubr.msk.f32.mxu1 %vm6025_vm0, %v6026_v11 }
  0x35   :  { %5790 = vmatpush3.bf16.msra.mxu0 %v5789_v49  ;;  %5820 = vmatpush3.bf16.msra.mxu1 %v5795_v37 }
  0x36   :  { %5797 = vmatprep.subr.bf16.mxu0 %v6024_v3  ;;  %5827 = vmatprep.subr.bf16.mxu1 %v6024_v3 }
  0x38   :  { %5382 = vmatmul.mubr.msk.f32.vlgmr.msra.gmra.mrb[10].mxu0 %vm116_vm1, %v6182_v18  ;;  %5437 = vmatmul.mubr.msk.f32.vlgmr.msra.gmra.mrb[10].mxu1 %vm116_vm1, %v6218_v28 }
  0x39   :  { %5799 = vmatpush3.bf16.msra.mxu0 %v5798_v52  ;;  %5829 = vmatpush3.bf16.msra.mxu1 %v5804_v40 }
  0x3a   :  { %5800 = vmatprep.subr.bf16.mxu0 %v6024_v3  ;;  %5830 = vmatprep.subr.bf16.mxu1 %v6024_v3 }
  0x3b   :  { %5403 = vmatprep.mubr.msk.f32.mxu0 %vm6025_vm0, %v6026_v11  ;;  %5458 = vmatprep.mubr.msk.f32.mxu1 %vm6025_vm0, %v6026_v11 }
  0x3d   :  { %5802 = vmatpush3.bf16.msra.mxu0 %v5801_v55  ;;  %5832 = vmatpush3.bf16.msra.mxu1 %v5807_v43 }
  0x3e   :  { %5809 = vmatprep.subr.bf16.mxu0 %v6024_v3  ;;  %5839 = vmatprep.subr.bf16.mxu1 %v6024_v3 }
  0x40   :  { %5404 = vmatmul.mubr.msk.f32.vlgmr.msra.gmra.mrb[12].mxu0 %vm116_vm1, %v6182_v18  ;;  %5459 = vmatmul.mubr.msk.f32.vlgmr.msra.gmra.mrb[12].mxu1 %vm116_vm1, %v6218_v28  ;;  %v5849_v18 = vpack.c.bf16 %v1298_v17, %v1297_v16 }
  0x41   :  { %5811 = vmatpush3.bf16.msra.mxu0 %v5786_v46  ;;  %5425 = vmatprep.mubr.msk.f32.mxu0 %vm6025_vm0, %v6026_v11  ;;  %v4997_v46 = vld [vmem:[%s7083_s8] ss:$0 sm:$0xff] }
  0x42   :  { %5812 = vmatprep.subr.bf16.mxu0 %v6024_v3  ;;  %5841 = vmatpush3.bf16.msra.mxu1 %v5840_v58 }
  0x43   :  { %5480 = vmatprep.mubr.msk.f32.mxu1 %vm6025_vm0, %v6026_v11  ;;  %5842 = vmatprep.subr.bf16.mxu1 %v6024_v3 }
  0x45   :  { %5814 = vmatpush3.bf16.msra.mxu0 %v5789_v49 }
  0x46   :  { %5821 = vmatprep.subr.bf16.mxu0 %v6024_v3  ;;  %5844 = vmatpush3.bf16.msra.mxu1 %v5843_v61 }
  0x47   :  { %5851 = vmatprep.subr.bf16.mxu1 %v6024_v3 }
  0x48   :  { %5426 = vmatmul.mubr.msk.f32.vlgmr.msra.gmra.mrb[14].mxu0 %vm116_vm1, %v6218_v28 }
  0x49   :  { %5823 = vmatpush3.bf16.msra.mxu0 %v5798_v52  ;;  %5447 = vmatprep.mubr.msk.f32.mxu0 %vm6025_vm0, %v6026_v11 }
  0x4a   :  { %5824 = vmatprep.subr.bf16.mxu0 %v6024_v3  ;;  %5481 = vmatmul.mubr.msk.f32.vlgmr.msra.gmra.mrb[14].mxu1 %vm116_vm1, %v6168_v13 }
  0x4b   :  { %5853 = vmatpush3.bf16.msra.mxu1 %v5852_v0  ;;  %5502 = vmatprep.mubr.msk.f32.mxu1 %vm6025_vm0, %v6026_v11 }
  0x4c   :  { %5854 = vmatprep.subr.bf16.mxu1 %v6024_v3 }
  0x4d   :  { %5826 = vmatpush3.bf16.msra.mxu0 %v5801_v55 }
  0x4e   :  { %5833 = vmatprep.subr.bf16.mxu0 %v6024_v3 }
  0x4f   :  { %5856 = vmatpush3.bf16.msra.mxu1 %v5855_v4 }
  0x50   :  { %5448 = vmatmul.mubr.msk.f32.vlgmr.msra.gmra.mrb[16].mxu0 %vm116_vm1, %v6218_v28  ;;  %5863 = vmatprep.subr.bf16.mxu1 %v6024_v3 }
  0x51   :  { %5469 = vmatprep.mubr.msk.f32.mxu0 %vm6025_vm0, %v6026_v11  ;;  %5835 = vmatpush3.bf16.msra.mxu0 %v5834_v7 }
  0x52   :  { %5503 = vmatmul.mubr.msk.f32.vlgmr.msra.gmra.mrb[16].mxu1 %vm116_vm1, %v6168_v13  ;;  %5836 = vmatprep.subr.bf16.mxu0 %v6024_v3 }
  0x53   :  { %5865 = vmatpush3.bf16.msra.mxu1 %v5840_v58  ;;  %5524 = vmatprep.mubr.msk.f32.mxu1 %vm6025_vm0, %v6026_v11  ;;  %v4999_v58 = vld [vmem:[%s7083_s8 + $0x2] ss:$0 sm:$0xff]  ;;  %s7105_s8 = sld [smem:[#allocation7_spill]] }
  0x54   :  { %5866 = vmatprep.subr.bf16.mxu1 %v6024_v3 }
  0x55   :  { %5838 = vmatpush3.bf16.msra.mxu0 %v5837_v10 }
  0x56   :  { %5845 = vmatprep.subr.bf16.mxu0 %v6024_v3 }
  0x57   :  { %5868 = vmatpush3.bf16.msra.mxu1 %v5843_v61 }
  0x58   :  { %5875 = vmatprep.subr.bf16.mxu1 %v6024_v3  ;;  %5470 = vmatmul.mubr.msk.f32.vlgmr.msra.gmra.mrb[18].mxu0 %vm116_vm1, %v6168_v13 }
  0x59   :  { %5847 = vmatpush3.bf16.msra.mxu0 %v5846_v15  ;;  %5491 = vmatprep.mubr.msk.f32.mxu0 %vm6025_vm0, %v6026_v11 }
  0x5a   :  { %5525 = vmatmul.mubr.msk.f32.vlgmr.msra.gmra.mrb[18].mxu1 %vm116_vm1, %v6207_v25  ;;  %5848 = vmatprep.subr.bf16.mxu0 %v6024_v3 }
  0x5b   :  { %5877 = vmatpush3.bf16.msra.mxu1 %v5852_v0  ;;  %5546 = vmatprep.mubr.msk.f32.mxu1 %vm6025_vm0, %v6026_v11 }
  0x5c   :  { %5878 = vmatprep.subr.bf16.mxu1 %v6024_v3 }
  0x5d   :  { %5850 = vmatpush3.bf16.msra.mxu0 %v5849_v18 }
  0x5e   :  { %5857 = vmatprep.subr.bf16.mxu0 %v6024_v3 }
  0x5f   :  { %5880 = vmatpush3.bf16.msra.mxu1 %v5855_v4 }
  0x60   :  { %5554 = vmatprep.subr.mxu1 %v6026_v11  ;;  %5492 = vmatmul.mubr.msk.f32.vlgmr.msra.gmra.mrb[20].mxu0 %vm116_vm1, %v6168_v13 }
  0x61   :  { %5859 = vmatpush3.bf16.msra.mxu0 %v5834_v7  ;;  %5513 = vmatprep.mubr.msk.f32.mxu0 %vm6025_vm0, %v6026_v11 }
  0x62   :  { %5547 = vmatmul.mubr.msk.f32.vlgmr.msra.gmra.mrb[20].mxu1 %vm116_vm1, %v6207_v25  ;;  %5860 = vmatprep.subr.bf16.mxu0 %v6024_v3 }
  0x63   :  { %5556 = vmatprep.mubr.msk.f32.mxu1 %vm6025_vm0, %v6026_v11 }
  0x65   :  { %5862 = vmatpush3.bf16.msra.mxu0 %v5837_v10  ;;  %v5022_v10 = vld [vmem:[%s7085_s10 + $0x1] ss:$0 sm:$0xff] }
  0x66   :  { %5869 = vmatprep.subr.bf16.mxu0 %v6024_v3 }
  0x68   :  { %5514 = vmatmul.mubr.msk.f32.vlgmr.msra.gmra.mrb[22].mxu0 %vm116_vm1, %v6207_v25 }
  0x69   :  { %5871 = vmatpush3.bf16.msra.mxu0 %v5846_v15  ;;  %5535 = vmatprep.mubr.msk.f32.mxu0 %vm6025_vm0, %v6026_v11 }
  0x6a   :  { %5872 = vmatprep.subr.bf16.mxu0 %v6024_v3 }
  0x6d   :  { %5874 = vmatpush3.bf16.msra.mxu0 %v5849_v18 }
  0x6e   :  { %5549 = vmatprep.subr.mxu0 %v6026_v11 }
  0x70   :  { %5536 = vmatmul.mubr.msk.f32.vlgmr.msra.gmra.mrb[24].mxu0 %vm116_vm1, %v6207_v25  ;;  %v5010_v25 = vld [vmem:[%s7084_s9 + $0x1] ss:$0 sm:$0xff] }
  0x71   :  { %5551 = vmatprep.mubr.msk.f32.mxu0 %vm6025_vm0, %v6026_v11 }
  0xe3   :  { %v186_v13 = vpop.f32.mrb[0].mxu0  ;;  %v396_v20 = vpop.f32.mrb[0].mxu1 }
  0xe4   :  { %v5295_v19 = vpop.f32.mrb[1].mxu0  ;;  %v5328_v21 = vpop.f32.mrb[1].mxu1  ;;  %v397_v41 = vadd.f32 %v5000_v38, %v396_v20  ;;  %v187_v49 = vadd.f32 %v4997_v46, %v186_v13 }
  0xe6   :  { %v1900_v47 = vmul.f32 0.35355338, %v397_v41  ;;  %v1897_v57 = vmul.f32 0.35355338, %v187_v49 }
  0xeb   :  { %v256_v22 = vpop.f32.mrb[2].mxu0  ;;  %v539_v24 = vpop.f32.mrb[2].mxu1 }
  0xec   :  { %v5306_v23 = vpop.f32.mrb[3].mxu0  ;;  %v5350_v26 = vpop.f32.mrb[3].mxu1  ;;  %v257_v32 = vadd.f32 %v4998_v30, %v256_v22  ;;  %v540_v51 = vadd.f32 %v4998_v30, %v539_v24 }
  0xed   :  { %v5021_v26 = vld [vmem:[%s7085_s10] ss:$0 sm:$0xff] }
  0xee   :  { %v1898_v37 = vmul.f32 0.35355338, %v257_v32  ;;  %v1902_v59 = vmul.f32 0.35355338, %v540_v51 }
  0xf3   :  { %v326_v27 = vpop.f32.mrb[4].mxu0  ;;  %v679_v3 = vpop.f32.mrb[4].mxu1 }
  0xf4   :  { %v5317_v28 = vpop.f32.mrb[5].mxu0  ;;  %v5372_v29 = vpop.f32.mrb[5].mxu1  ;;  %v327_v61 = vadd.f32 %v4999_v58, %v326_v27  ;;  %v680_v63 = vadd.f32 %v5000_v38, %v679_v3 }
  0xf6   :  { %v1899_v6 = vmul.f32 0.35355338, %v327_v61  ;;  %v1904_v7 = vmul.f32 0.35355338, %v680_v63 }
  0xfb   :  { %v6460_v31 = vpop.f32.mrb[6].mxu0  ;;  %v863_v33 = vpop.f32.mrb[6].mxu1 }
  0xfc   :  { %v5339_v34 = vpop.f32.mrb[7].mxu0  ;;  %v864_v35 = vadd.f32 %v5010_v25, %v863_v33  ;;  %v5394_v36 = vpop.f32.mrb[7].mxu1  ;;  %v470_v8 = vadd.f32 %v4997_v46, %v6460_v31 }
  0xfe   :  { %5555 = vmatpush3.xpose.msk.msra.mxu1 %vm1905_vm2, %v864_v35  ;;  %v1901_v18 = vmul.f32 0.35355338, %v470_v8 }
  0xff   :  { %5564 = vmatprep.subr.mxu1 %v6026_v11 }
 0x101   :  { %5557 = vmatmul.mubr.msk.f32.vlgmr.msra.gmra.mrb[22].mxu1 %vm1905_vm2, %v1898_v37 }
 0x102   :  { %5566 = vmatprep.mubr.msk.f32.mxu1 %vm6025_vm0, %v6026_v11 }
 0x103   :  { %v6471_v40 = vpop.f32.mrb[8].mxu0  ;;  %v1003_v42 = vpop.f32.mrb[8].mxu1 }
 0x104   :  { %v5361_v43 = vpop.f32.mrb[9].mxu0  ;;  %v1004_v44 = vadd.f32 %v5012_v39, %v1003_v42  ;;  %v5416_v45 = vpop.f32.mrb[9].mxu1  ;;  %v610_v13 = vadd.f32 %v4999_v58, %v6471_v40 }
 0x106   :  { %5565 = vmatpush3.xpose.msk.msra.mxu1 %vm1905_vm2, %v1004_v44  ;;  %v1903_v22 = vmul.f32 0.35355338, %v610_v13 }
 0x107   :  { %5574 = vmatprep.subr.mxu1 %v6026_v11 }
 0x109   :  { %5567 = vmatmul.mubr.msk.f32.vlgmr.msra.gmra.mrb[24].mxu1 %vm1905_vm2, %v1900_v47 }
 0x10a   :  { %5576 = vmatprep.mubr.msk.f32.mxu1 %vm6025_vm0, %v6026_v11 }
 0x10b   :  { %v793_v50 = vpop.f32.mrb[10].mxu0  ;;  %v1143_v53 = vpop.f32.mrb[10].mxu1 }
 0x10c   :  { %v794_v52 = vadd.f32 %v5009_v48, %v793_v50  ;;  %v5383_v54 = vpop.f32.mrb[11].mxu0  ;;  %v1144_v55 = vadd.f32 %v5010_v25, %v1143_v53  ;;  %v5438_v56 = vpop.f32.mrb[11].mxu1 }
 0x10e   :  { %5550 = vmatpush3.xpose.msk.msra.mxu0 %vm1905_vm2, %v794_v52  ;;  %5575 = vmatpush3.xpose.msk.msra.mxu1 %vm1905_vm2, %v1144_v55 }
 0x10f   :  { %5559 = vmatprep.subr.mxu0 %v6026_v11  ;;  %5584 = vmatprep.subr.mxu1 %v6026_v11 }
 0x111   :  { %5552 = vmatmul.mubr.msk.f32.vlgmr.msra.gmra.mrb[26].mxu0 %vm1905_vm2, %v1897_v57  ;;  %5577 = vmatmul.mubr.msk.f32.vlgmr.msra.gmra.mrb[26].mxu1 %vm1905_vm2, %v1902_v59 }
 0x112   :  { %5561 = vmatprep.mubr.msk.f32.mxu0 %vm6025_vm0, %v6026_v11  ;;  %5586 = vmatprep.mubr.msk.f32.mxu1 %vm6025_vm0, %v6026_v11 }
 0x113   :  { %v933_v62 = vpop.f32.mrb[12].mxu0  ;;  %v1283_v1 = vpop.f32.mrb[12].mxu1 }
 0x114   :  { %v934_v0 = vadd.f32 %v5011_v60, %v933_v62  ;;  %v5405_v2 = vpop.f32.mrb[13].mxu0  ;;  %v1284_v4 = vadd.f32 %v5012_v39, %v1283_v1  ;;  %v5460_v5 = vpop.f32.mrb[13].mxu1 }
 0x116   :  { %5560 = vmatpush3.xpose.msk.msra.mxu0 %vm1905_vm2, %v934_v0  ;;  %5585 = vmatpush3.xpose.msk.msra.mxu1 %vm1905_vm2, %v1284_v4 }
 0x117   :  { %5569 = vmatprep.subr.mxu0 %v6026_v11  ;;  %5594 = vmatprep.subr.mxu1 %v6026_v11 }
 0x119   :  { %5562 = vmatmul.mubr.msk.f32.vlgmr.msra.gmra.mrb[28].mxu0 %vm1905_vm2, %v1899_v6  ;;  %5587 = vmatmul.mubr.msk.f32.vlgmr.msra.gmra.mrb[28].mxu1 %vm1905_vm2, %v1904_v7 }
 0x11a   :  { %5571 = vmatprep.mubr.msk.f32.mxu0 %vm6025_vm0, %v6026_v11  ;;  %5596 = vmatprep.mubr.msk.f32.mxu1 %vm6025_vm0, %v6026_v11 }
 0x11b   :  { %v1073_v9 = vpop.f32.mrb[14].mxu0 }
 0x11c   :  { %v1074_v12 = vadd.f32 %v5009_v48, %v1073_v9  ;;  %v5427_v14 = vpop.f32.mrb[15].mxu0 }
 0x11d   :  { %v1470_v15 = vpop.f32.mrb[14].mxu1 }
 0x11e   :  { %5570 = vmatpush3.xpose.msk.msra.mxu0 %vm1905_vm2, %v1074_v12  ;;  %v1471_v16 = vadd.f32 %v5022_v10, %v1470_v15  ;;  %v5482_v17 = vpop.f32.mrb[15].mxu1 }
 0x11f   :  { %5579 = vmatprep.subr.mxu0 %v6026_v11 }
 0x120   :  { %5595 = vmatpush3.msra.mxu1 %v1471_v16 }
 0x121   :  { %5572 = vmatmul.mubr.msk.f32.vlgmr.msra.gmra.mrb[30].mxu0 %vm1905_vm2, %v1901_v18  ;;  %5604 = vmatprep.subr.mxu1 %v6026_v11 }
 0x122   :  { %5581 = vmatprep.mubr.msk.f32.mxu0 %vm6025_vm0, %v6026_v11 }
 0x123   :  { %v1213_v19 = vpop.f32.mrb[16].mxu0 }
 0x124   :  { %v1214_v20 = vadd.f32 %v5011_v60, %v1213_v19  ;;  %v5449_v21 = vpop.f32.mrb[17].mxu0 }
 0x125   :  { %v6528_v23 = vpop.f32.mrb[16].mxu1 }
 0x126   :  { %5580 = vmatpush3.xpose.msk.msra.mxu0 %vm1905_vm2, %v1214_v20  ;;  %v5504_v24 = vpop.f32.mrb[17].mxu1 }
 0x127   :  { %5589 = vmatprep.subr.mxu0 %v6026_v11 }
 0x129   :  { %5582 = vmatmul.mubr.msk.f32.vlgmr.msra.gmra.mrb[32].mxu0 %vm1905_vm2, %v1903_v22 }
 0x12a   :  { %5591 = vmatprep.mubr.msk.f32.mxu0 %vm6025_vm0, %v6026_v11 }
 0x12b   :  { %v1400_v27 = vpop.f32.mrb[18].mxu0 }
 0x12c   :  { %v1401_v3 = vadd.f32 %v5021_v26, %v1400_v27  ;;  %v5471_v29 = vpop.f32.mrb[19].mxu0 }
 0x12d   :  { %v1753_v28 = vpop.f32.mrb[18].mxu1 }
 0x12e   :  { %v6533_v30 = vadd.f32 %v5022_v10, %v1753_v28  ;;  %v5526_v25 = vpop.f32.mrb[19].mxu1  ;;  %5590 = vmatpush3.msra.mxu0 %v1401_v3 }
 0x12f   :  { %5599 = vmatprep.subr.mxu0 %v6026_v11 }
 0x133   :  { %v6538_v33 = vpop.f32.mrb[20].mxu0 }
 0x134   :  { %v5493_v34 = vpop.f32.mrb[21].mxu0 }
 0x135   :  { %v6536_v31 = vpop.f32.mrb[20].mxu1 }
 0x136   :  { %v5548_v32 = vpop.f32.mrb[21].mxu1 }
 0x13b   :  { %v1683_v35 = vpop.f32.mrb[22].mxu0 }
 0x13c   :  { %v6540_v36 = vadd.f32 %v5021_v26, %v1683_v35  ;;  %v5515_v37 = vpop.f32.mrb[23].mxu0 }
 0x143   :  { %v6542_v38 = vpop.f32.mrb[24].mxu0 }
 0x144   :  { %v5537_v39 = vpop.f32.mrb[25].mxu0 }
 0x1d4   :  { %v2054_v40 = vpop.f32.mrb[22].mxu1 }
 0x1d5   :  { %v5558_v41 = vpop.f32.mrb[23].mxu1  ;;  %v2517_v49 = vsel %vm1905_vm2, %v2054_v40, -inf }
 0x1dc   :  { %v2206_v42 = vpop.f32.mrb[24].mxu1 }
 0x1dd   :  { %v5568_v43 = vpop.f32.mrb[25].mxu1  ;;  %v2523_v55 = vsel %vm1905_vm2, %v2206_v42, -inf }
 0x1e4   :  { %v1978_v44 = vpop.f32.mrb[26].mxu0  ;;  %v2358_v45 = vpop.f32.mrb[26].mxu1 }
 0x1e5   :  { %v5553_v46 = vpop.f32.mrb[27].mxu0  ;;  %v2514_v47 = vsel %vm1905_vm2, %v1978_v44, -inf  ;;  %v5578_v48 = vpop.f32.mrb[27].mxu1  ;;  %v2529_v58 = vsel %vm1905_vm2, %v2358_v45, -inf }
 0x1e6   :  { %2515 = vmax.xlane.f32.xlu0 %v2514_v47 }
 0x1ea   :  { %2518 = vmax.xlane.f32.xlu0 %v2517_v49 }
 0x1ec   :  { %v2130_v50 = vpop.f32.mrb[28].mxu0  ;;  %v2510_v51 = vpop.f32.mrb[28].mxu1 }
 0x1ed   :  { %v5563_v52 = vpop.f32.mrb[29].mxu0  ;;  %v2520_v53 = vsel %vm1905_vm2, %v2130_v50, -inf  ;;  %v5588_v54 = vpop.f32.mrb[29].mxu1  ;;  %v2535_v60 = vsel %vm1905_vm2, %v2510_v51, -inf }
 0x1ee   :  { %2521 = vmax.xlane.f32.xlu1 %v2520_v53 }
 0x1f2   :  { %2524 = vmax.xlane.f32.xlu1 %v2523_v55  ;;  %v5024_v55 = vld [vmem:[%s7085_s10 + $0x3] ss:$0 sm:$0xff] }
 0x1f4   :  { %v2282_v56 = vpop.f32.mrb[30].mxu0 }
 0x1f5   :  { %v5573_v57 = vpop.f32.mrb[31].mxu0  ;;  %v2526_v59 = vsel %vm1905_vm2, %v2282_v56, -inf }
 0x1f6   :  { %2530 = vmax.xlane.f32.xlu1 %v2529_v58  ;;  %2527 = vmax.xlane.f32.xlu0 %v2526_v59  ;;  %v1611_v59 = vadd.f32 %v5024_v55, %v6528_v23 }
 0x1fa   :  { %2536 = vmax.xlane.f32.xlu1 %v2535_v60 }
 0x1fc   :  { %v2434_v61 = vpop.f32.mrb[32].mxu0 }
 0x1fd   :  { %v5583_v62 = vpop.f32.mrb[33].mxu0  ;;  %v2532_v63 = vsel %vm1905_vm2, %v2434_v61, -inf }
 0x1fe   :  { %2533 = vmax.xlane.f32.xlu0 %v2532_v63 }
 0x273   :  { %v2516_v0 = vpop.xlane.xlu0 %2515 }
 0x274   :  { %v2538_v1 = vsub.f32 %v1978_v44, %v2516_v0 }
 0x276   :  { %v2546_v2 = vmul.f32 1.442695, %v2538_v1 }
 0x277   :  { %v2519_v4 = vpop.xlane.xlu0 %2518 }
 0x278   :  { %5935 = vpow2.f32 %v2546_v2  ;;  %v2539_v5 = vsub.f32 %v2054_v40, %v2519_v4 }
 0x27a   :  { %v2548_v6 = vmul.f32 1.442695, %v2539_v5 }
 0x27b   :  { %v2522_v7 = vpop.xlane.xlu1 %2521 }
 0x27c   :  { %5937 = vpow2.f32 %v2548_v6  ;;  %v2540_v8 = vsub.f32 %v2130_v50, %v2522_v7  ;;  %v5023_v50 = vld [vmem:[%s7085_s10 + $0x2] ss:$0 sm:$0xff] }
 0x27d   :  { %v1541_v54 = vadd.f32 %v5023_v50, %v6538_v33  ;;  %v1824_v6 = vadd.f32 %v5023_v50, %v6542_v38  ;;  %v3186_v38 = vld [vmem:[%s7086_s11] sm:$0xff] }
 0x27e   :  { %v2550_v9 = vmul.f32 1.442695, %v2540_v8 }
 0x27f   :  { %v2525_v10 = vpop.xlane.xlu1 %2524 }
 0x280   :  { %5939 = vpow2.f32 %v2550_v9  ;;  %v2541_v12 = vsub.f32 %v2206_v42, %v2525_v10  ;;  %v3187_v9 = vld [vmem:[%s7086_s11 + $0x8] sm:$0xff]  ;;  %v3188_v10 = vld [vmem:[%s7086_s11 + $0x10] sm:$0xff] }
 0x282   :  { %v5936_v14 = vpop.eup %5935  ;;  %v2552_v15 = vmul.f32 1.442695, %v2541_v12 }
 0x283   :  { %v2531_v16 = vpop.xlane.xlu1 %2530  ;;  %v2528_v17 = vpop.xlane.xlu0 %2527  ;;  %v2562_v18 = vsel %vm1905_vm2, %v5936_v14, 0.0 }
 0x284   :  { %5941 = vpow2.f32 %v2552_v15  ;;  %v2543_v13 = vsub.f32 %v2358_v45, %v2531_v16  ;;  %v2542_v19 = vsub.f32 %v2282_v56, %v2528_v17  ;;  %2563 = vadd.xlane.f32.xlu0 %v2562_v18  ;;  %v3189_v15 = vld [vmem:[%s7086_s11 + $0x18] sm:$0xff] }
 0x286   :  { %v5938_v20 = vpop.eup %5937  ;;  %v2556_v21 = vmul.f32 1.442695, %v2543_v13  ;;  %v2554_v22 = vmul.f32 1.442695, %v2542_v19 }
 0x287   :  { %v2537_v24 = vpop.xlane.xlu1 %2536  ;;  %v2565_v26 = vsel %vm1905_vm2, %v5938_v20, 0.0 }
 0x288   :  { %5943 = vpow2.f32 %v2556_v21  ;;  %v2545_v27 = vsub.f32 %v2510_v51, %v2537_v24  ;;  %2566 = vadd.xlane.f32.xlu1 %v2565_v26 }
 0x289   :  { %5945 = vpow2.f32 %v2554_v22 }
 0x28a   :  { %v5940_v28 = vpop.eup %5939  ;;  %v2560_v3 = vmul.f32 1.442695, %v2545_v27 }
 0x28b   :  { %v2534_v29 = vpop.xlane.xlu0 %2533  ;;  %v2568_v25 = vsel %vm1905_vm2, %v5940_v28, 0.0 }
 0x28c   :  { %5947 = vpow2.f32 %v2560_v3  ;;  %v2544_v32 = vsub.f32 %v2434_v61, %v2534_v29  ;;  %2569 = vadd.xlane.f32.xlu0 %v2568_v25 }
 0x28e   :  { %v5942_v34 = vpop.eup %5941  ;;  %v2558_v35 = vmul.f32 1.442695, %v2544_v32  ;;  %v3788_v32 = vlaneseq }
 0x28f   :  { %v2571_v37 = vsel %vm1905_vm2, %v5942_v34, 0.0 }
 0x290   :  { %5949 = vpow2.f32 %v2558_v35  ;;  %2572 = vadd.xlane.f32.xlu1 %v2571_v37  ;;  %v6644_v37 = vshrl.u32 %v3788_v32, 7 }
 0x292   :  { %v5944_v39 = vpop.eup %5943 }
 0x293   :  { %v5946_v40 = vpop.eup %5945  ;;  %v2577_v41 = vsel %vm1905_vm2, %v5944_v39, 0.0 }
 0x294   :  { %2578 = vadd.xlane.f32.xlu1 %v2577_v41  ;;  %v2574_v42 = vsel %vm1905_vm2, %v5946_v40, 0.0 }
 0x295   :  { %2575 = vadd.xlane.f32.xlu0 %v2574_v42 }
 0x296   :  { %v5948_v43 = vpop.eup %5947 }
 0x297   :  { %v2583_v44 = vsel %vm1905_vm2, %v5948_v43, 0.0 }
 0x298   :  { %2584 = vadd.xlane.f32.xlu1 %v2583_v44 }
 0x29a   :  { %v6559_v45 = vpop.eup %5949 }
 0x29b   :  { %v2580_v46 = vsel %vm1905_vm2, %v6559_v45, 0.0 }
 0x29c   :  { %2581 = vadd.xlane.f32.xlu0 %v2580_v46  ;;  %v6653_v46 = vld [vmem:[%s7093_s18] sm:$0xff] }
 0x311   :  { %v2564_v47 = vpop.xlane.xlu0 %2563 }
 0x312   :  { %5951 = vrcp.f32 %v2564_v47 }
 0x315   :  { %v2567_v48 = vpop.xlane.xlu1 %2566 }
 0x316   :  { %5953 = vrcp.f32 %v2567_v48 }
 0x319   :  { %v2570_v49 = vpop.xlane.xlu0 %2569 }
 0x31a   :  { %5955 = vrcp.f32 %v2570_v49 }
 0x31c   :  { %v5952_v51 = vpop.eup %5951 }
 0x31d   :  { %v2594_v52 = vmul.f32 %v5952_v51, %v5936_v14  ;;  %v2573_v53 = vpop.xlane.xlu1 %2572 }
 0x31e   :  { %5957 = vrcp.f32 %v2573_v53 }
 0x31f   :  { %5592 = vmatmul.mubr.msk.f32.vlgmr.msra.gmra.mrb[34].mxu0 %vm1905_vm2, %v2594_v52 }
 0x320   :  { %v5954_v56 = vpop.eup %5953  ;;  %5600 = vmatpush3.msra.mxu0 %v1541_v54  ;;  %5601 = vmatprep.mubr.msk.f32.mxu0 %vm6025_vm0, %v6026_v11 }
 0x321   :  { %v2595_v57 = vmul.f32 %v5954_v56, %v5938_v20  ;;  %v2579_v58 = vpop.xlane.xlu1 %2578  ;;  %5609 = vmatprep.subr.mxu0 %v6026_v11 }
 0x322   :  { %5959 = vrcp.f32 %v2579_v58  ;;  %v2576_v33 = vpop.xlane.xlu0 %2575 }
 0x323   :  { %5961 = vrcp.f32 %v2576_v33  ;;  %5597 = vmatmul.mubr.msk.f32.vlgmr.msra.gmra.mrb[30].mxu1 %vm1905_vm2, %v2595_v57  ;;  %v5995_v33 = vld [vmem:[%s7102_s21] sm:$0xff] }
 0x324   :  { %v5956_v60 = vpop.eup %5955  ;;  %5605 = vmatpush3.msra.mxu1 %v1611_v59  ;;  %5606 = vmatprep.mubr.msk.f32.mxu1 %vm6025_vm0, %v6026_v11 }
 0x325   :  { %v2596_v61 = vmul.f32 %v5956_v60, %v5940_v28  ;;  %v2585_v62 = vpop.xlane.xlu1 %2584  ;;  %5614 = vmatprep.subr.mxu1 %v6026_v11 }
 0x326   :  { %5963 = vrcp.f32 %v2585_v62 }
 0x327   :  { %5602 = vmatmul.mubr.msk.f32.vlgmr.msra.gmra.mrb[36].mxu0 %vm1905_vm2, %v2596_v61 }
 0x328   :  { %v5958_v63 = vpop.eup %5957  ;;  %5610 = vmatpush3.msra.mxu0 %v6540_v36  ;;  %5611 = vmatprep.mubr.msk.f32.mxu0 %vm6025_vm0, %v6026_v11  ;;  %v1894_v36 = vadd.f32 %v5024_v55, %v6536_v31 }
 0x329   :  { %v2597_v23 = vmul.f32 %v5958_v63, %v5942_v34  ;;  %v2582_v0 = vpop.xlane.xlu0 %2581  ;;  %5619 = vmatprep.subr.mxu0 %v6026_v11 }
 0x32a   :  { %5965 = vrcp.f32 %v2582_v0 }
 0x32b   :  { %5607 = vmatmul.mubr.msk.f32.vlgmr.msra.gmra.mrb[32].mxu1 %vm1905_vm2, %v2597_v23 }
 0x32c   :  { %v5960_v1 = vpop.eup %5959  ;;  %5615 = vmatpush3.msra.mxu1 %v6533_v30  ;;  %5616 = vmatprep.mubr.msk.f32.mxu1 %vm6025_vm0, %v6026_v11 }
 0x32d   :  { %v5962_v2 = vpop.eup %5961  ;;  %v2599_v4 = vmul.f32 %v5960_v1, %v5944_v39  ;;  %5624 = vmatprep.subr.mxu1 %v6026_v11 }
 0x32e   :  { %v2598_v5 = vmul.f32 %v5962_v2, %v5946_v40 }
 0x32f   :  { %5617 = vmatmul.mubr.msk.f32.vlgmr.msra.gmra.mrb[34].mxu1 %vm1905_vm2, %v2599_v4 }
 0x330   :  { %v5964_v7 = vpop.eup %5963  ;;  %5612 = vmatmul.mubr.msk.f32.vlgmr.msra.gmra.mrb[38].mxu0 %vm1905_vm2, %v2598_v5  ;;  %5625 = vmatpush3.msra.mxu1 %v1894_v36 }
 0x331   :  { %v2601_v8 = vmul.f32 %v5964_v7, %v5948_v43  ;;  %5620 = vmatpush3.msra.mxu0 %v1824_v6  ;;  %5626 = vmatprep.mubr.msk.f32.mxu1 %vm6025_vm0, %v6026_v11  ;;  %v3790_v43 = vsub.s32 0, %v6644_v37  ;;  %v5996_v7 = vld [vmem:[%s7102_s21 + $0x8] sm:$0xff] }
 0x332   :  { %5621 = vmatprep.mubr.msk.f32.mxu0 %vm6025_vm0, %v6026_v11  ;;  %5629 = vmatprep.subr.mxu0 %v6026_v11 }
 0x333   :  { %5627 = vmatmul.mubr.msk.f32.vlgmr.msra.gmra.mrb[36].mxu1 %vm1905_vm2, %v2601_v8  ;;  %5634 = vmatprep.subr.mxu1 %v6026_v11  ;;  %v3791_v49 = vrot.slane %v6653_v46, %v3790_v43 }
 0x334   :  { %v5966_v30 = vpop.eup %5965  ;;  %5636 = vmatprep.mubr.msk.f32.mxu1 %vm6025_vm0, %v6026_v11  ;;  %5635 = vmatpush3.msra.mxu1 %v3187_v9 }
 0x335   :  { %v2600_v31 = vmul.f32 %v5966_v30, %v6559_v45  ;;  %5644 = vmatprep.subr.mxu1 %v6026_v11 }
 0x337   :  { %5622 = vmatmul.mubr.msk.f32.vlgmr.msra.gmra.mrb[40].mxu0 %vm1905_vm2, %v2600_v31 }
 0x338   :  { %5631 = vmatprep.mubr.msk.f32.mxu0 %vm6025_vm0, %v6026_v11  ;;  %5630 = vmatpush3.msra.mxu0 %v3186_v38 }
 0x339   :  { %5639 = vmatprep.subr.mxu0 %v6026_v11 }
 0x3f2   :  { %v2671_v12 = vpop.f32.mrb[34].mxu0 }
 0x3f3   :  { %v5593_v14 = vpop.f32.mrb[35].mxu0  ;;  %5632 = vmatmul.mubr.msk.f32.vlgmr.msra.gmra.mrb[42].mxu0 %vm1905_vm2, %v2671_v12 }
 0x3f4   :  { %5640 = vmatpush3.msra.mxu0 %v3188_v10  ;;  %5641 = vmatprep.mubr.msk.f32.mxu0 %vm6025_vm0, %v6026_v11 }
 0x3f5   :  { %5649 = vmatprep.subr.mxu0 %v6026_v11 }
 0x3f6   :  { %v2744_v16 = vpop.f32.mrb[30].mxu1 }
 0x3f7   :  { %v5598_v17 = vpop.f32.mrb[31].mxu1  ;;  %5637 = vmatmul.mubr.msk.f32.vlgmr.msra.gmra.mrb[38].mxu1 %vm1905_vm2, %v2744_v16 }
 0x3f8   :  { %5645 = vmatpush3.msra.mxu1 %v3189_v15  ;;  %5646 = vmatprep.mubr.msk.f32.mxu1 %vm6025_vm0, %v6026_v11 }
 0x3f9   :  { %5654 = vmatprep.subr.mxu1 %v6026_v11 }
 0x3fa   :  { %v2817_v18 = vpop.f32.mrb[36].mxu0 }
 0x3fb   :  { %v5603_v13 = vpop.f32.mrb[37].mxu0  ;;  %5642 = vmatmul.mubr.msk.f32.vlgmr.msra.gmra.mrb[44].mxu0 %vm1905_vm2, %v2817_v18 }
 0x3fc   :  { %5650 = vmatpush3.msra.mxu0 %v3186_v38  ;;  %5651 = vmatprep.mubr.msk.f32.mxu0 %vm6025_vm0, %v6026_v11  ;;  %v3837_v13 = vld [vmem:[%s7087_s12] sm:$0xff] }
 0x3fd   :  { %5659 = vmatprep.subr.mxu0 %v6026_v11 }
 0x3fe   :  { %v2890_v19 = vpop.f32.mrb[32].mxu1 }
 0x3ff   :  { %v5608_v20 = vpop.f32.mrb[33].mxu1  ;;  %5647 = vmatmul.mubr.msk.f32.vlgmr.msra.gmra.mrb[40].mxu1 %vm1905_vm2, %v2890_v19  ;;  %v3838_v19 = vld [vmem:[%s7087_s12 + $0x8] sm:$0xff] }
 0x400   :  { %5655 = vmatpush3.msra.mxu1 %v3187_v9  ;;  %5656 = vmatprep.mubr.msk.f32.mxu1 %vm6025_vm0, %v6026_v11  ;;  %v5881_v20 = vpack.c.bf16 %v3838_v19, %v3837_v13 }
 0x401   :  { %5664 = vmatprep.subr.mxu1 %v6026_v11 }
 0x402   :  { %v3036_v21 = vpop.f32.mrb[34].mxu1 }
 0x403   :  { %v2963_v22 = vpop.f32.mrb[38].mxu0  ;;  %v5618_v24 = vpop.f32.mrb[35].mxu1  ;;  %5657 = vmatmul.mubr.msk.f32.vlgmr.msra.gmra.mrb[42].mxu1 %vm1905_vm2, %v3036_v21  ;;  %v3839_v21 = vld [vmem:[%s7087_s12 + $0x10] sm:$0xff] }
 0x404   :  { %v5613_v26 = vpop.f32.mrb[39].mxu0  ;;  %5652 = vmatmul.mubr.msk.f32.vlgmr.msra.gmra.mrb[46].mxu0 %vm1905_vm2, %v2963_v22  ;;  %5665 = vmatpush3.msra.mxu1 %v3189_v15  ;;  %v3840_v22 = vld [vmem:[%s7087_s12 + $0x18] sm:$0xff] }
 0x405   :  { %5666 = vmatprep.mubr.msk.f32.mxu1 %vm6025_vm0, %v6026_v11  ;;  %5660 = vmatpush3.msra.mxu0 %v3188_v10  ;;  %v5885_v24 = vpack.c.bf16 %v3840_v22, %v3839_v21  ;;  %v4455_v26 = vld [vmem:[%s7089_s14] sm:$0xff] }
 0x406   :  { %v3182_v27 = vpop.f32.mrb[36].mxu1  ;;  %5661 = vmatprep.mubr.msk.f32.mxu0 %vm6025_vm0, %v6026_v11  ;;  %5882 = vmatprep.subr.bf16.mxu0 %v5881_v20  ;;  %v3972_v21 = vld [vmem:[%s7105_s8] sm:$0xf]  ;;  %v3973_v22 = vld [vmem:[%s7105_s8 + $0x4] sm:$0xf] }
 0x407   :  { %v5628_v28 = vpop.f32.mrb[37].mxu1  ;;  %5667 = vmatmul.mubr.msk.f32.vlgmr.msra.gmra.mrb[44].mxu1 %vm1905_vm2, %v3182_v27 }
 0x40a   :  { %v3109_v3 = vpop.f32.mrb[40].mxu0 }
 0x40b   :  { %v5623_v29 = vpop.f32.mrb[41].mxu0  ;;  %5662 = vmatmul.mubr.msk.f32.vlgmr.msra.gmra.mrb[48].mxu0 %vm1905_vm2, %v3109_v3 }
 0x40c   :  { %5884 = vmatpush3.bf16.msra.mxu0 %v5881_v20  ;;  %v3825_v29 = vsub.s32 1, %v6644_v37  ;;  %v3970_v20 = vld [vmem:[%s7104_s30] sm:$0xf] }
 0x40d   :  { %5886 = vmatprep.subr.bf16.mxu0 %v5885_v24 }
 0x410   :  { %5888 = vmatpush3.bf16.msra.mxu0 %v5885_v24 }
 0x411   :  { %5691 = vmatprep.subr.mxu0 %v4455_v26 }
 0x4c6   :  { %v3259_v25 = vpop.f32.mrb[42].mxu0 }
 0x4c7   :  { %v5633_v34 = vpop.f32.mrb[43].mxu0  ;;  %v3774_v39 = vsel %vm116_vm1, %v3259_v25, 0.0  ;;  %v3831_v25 = vsub.s32 2, %v6644_v37 }
 0x4c8   :  { %v3826_v34 = vrot.slane %v6653_v46, %v3825_v29 }
 0x4ca   :  { %v3332_v35 = vpop.f32.mrb[38].mxu1 }
 0x4cb   :  { %v3775_v40 = vsel %vm116_vm1, %v3332_v35, 0.0  ;;  %v5638_v41 = vpop.f32.mrb[39].mxu1 }
 0x4cc   :  { %v3776_v42 = vadd.f32 %v3775_v40, %v3774_v39  ;;  %v3832_v41 = vrot.slane %v6653_v46, %v3831_v25 }
 0x4ce   :  { %v3405_v11 = vpop.f32.mrb[44].mxu0 }
 0x4cf   :  { %v3777_v44 = vsel %vm116_vm1, %v3405_v11, 0.0  ;;  %v5643_v45 = vpop.f32.mrb[45].mxu0 }
 0x4d0   :  { %v3778_v47 = vadd.f32 %v3777_v44, %v3776_v42  ;;  %v5997_v45 = vld [vmem:[%s7103_s2] sm:$0xff] }
 0x4d2   :  { %v3478_v48 = vpop.f32.mrb[40].mxu1 }
 0x4d3   :  { %v3779_v50 = vsel %vm116_vm1, %v3478_v48, 0.0  ;;  %v5648_v51 = vpop.f32.mrb[41].mxu1 }
 0x4d4   :  { %v3780_v52 = vadd.f32 %v3779_v50, %v3778_v47 }
 0x4d6   :  { %v3792_v53 = vadd.f32 %v3791_v49, %v3780_v52  ;;  %v3624_v54 = vpop.f32.mrb[42].mxu1  ;;  %v5998_v52 = vld [vmem:[%s7103_s2 + $0x8] sm:$0xff] }
 0x4d7   :  { %v3551_v55 = vpop.f32.mrb[46].mxu0  ;;  %v3782_v56 = vsel %vm116_vm1, %v3624_v54, 0.0  ;;  %v5658_v57 = vpop.f32.mrb[43].mxu1  ;;  %v4453_v54 = vld [vmem:[%s7079_s4] sm:$0xff] }
 0x4d8   :  { %v3781_v58 = vsel %vm116_vm1, %v3551_v55, 0.0  ;;  %v5653_v59 = vpop.f32.mrb[47].mxu0  ;;  %v3794_v60 = vadd.f32 %v5995_v33, %v3792_v53  ;;  %v4454_v55 = vld [vmem:[%s7079_s4 + $0x8] sm:$0xff] }
 0x4d9   :  { %v3783_v61 = vadd.f32 %v3782_v56, %v3781_v58  ;;  %v4458_v56 = vsub.s32 5, %v6644_v37 }
 0x4da   :  { %v3770_v62 = vpop.f32.mrb[44].mxu1  ;;  %v3796_v63 = vsel %vm116_vm1, %v3794_v60, 0.0 }
 0x4db   :  { %v5668_v23 = vpop.f32.mrb[45].mxu1  ;;  %3797 = vadd.xlane.f32.xlu0 %v3796_v63  ;;  %v3786_v36 = vsel %vm116_vm1, %v3770_v62, 0.0  ;;  %v4459_v59 = vrot.slane %v6653_v46, %v4458_v56 }
 0x4de   :  { %v3697_v0 = vpop.f32.mrb[48].mxu0 }
 0x4df   :  { %v3784_v1 = vsel %vm116_vm1, %v3697_v0, 0.0  ;;  %v5663_v2 = vpop.f32.mrb[49].mxu0  ;;  %v3843_v0 = vsub.s32 3, %v6644_v37 }
 0x4e0   :  { %v3785_v4 = vadd.f32 %v3784_v1, %v3783_v61 }
 0x4e1   :  { %v3844_v1 = vrot.slane %v6653_v46, %v3843_v0 }
 0x4e2   :  { %v3787_v5 = vadd.f32 %v3786_v36, %v3785_v4 }
 0x4e4   :  { %v3793_v6 = vadd.f32 %v3791_v49, %v3787_v5 }
 0x4e6   :  { %v3795_v8 = vadd.f32 %v5996_v7, %v3793_v6 }
 0x4e8   :  { %v3799_v30 = vsel %vm116_vm1, %v3795_v8, 0.0 }
 0x4e9   :  { %3800 = vadd.xlane.f32.xlu1 %v3799_v30 }
 0x568   :  { %v3798_v31 = vpop.xlane.xlu0 %3797 }
 0x569   :  { %v3803_v38 = vmul.f32 0.03125, %v3798_v31 }
 0x56b   :  { %v3805_v9 = vsub.f32 %v3794_v60, %v3803_v38 }
 0x56d   :  { %v3807_v10 = vmul.f32 %v3805_v9, %v3805_v9 }
 0x56f   :  { %v3809_v12 = vsel %vm116_vm1, %v3807_v10, 0.0 }
 0x570   :  { %3810 = vadd.xlane.f32.xlu0 %v3809_v12 }
 0x576   :  { %v3801_v14 = vpop.xlane.xlu1 %3800 }
 0x577   :  { %v3804_v15 = vmul.f32 0.03125, %v3801_v14 }
 0x579   :  { %v3806_v16 = vsub.f32 %v3795_v8, %v3804_v15 }
 0x57b   :  { %v3808_v17 = vmul.f32 %v3806_v16, %v3806_v16 }
 0x57d   :  { %v3812_v18 = vsel %vm116_vm1, %v3808_v17, 0.0 }
 0x57e   :  { %3813 = vadd.xlane.f32.xlu1 %v3812_v18 }
 0x5fd   :  { %v3811_v27 = vpop.xlane.xlu0 %3810 }
 0x5fe   :  { %v3815_v28 = vmul.f32 0.03125, %v3811_v27  ;;  %v3975_v27 = vld [vmem:[%s7105_s8 + $0xc] sm:$0xf] }
 0x600   :  { %v3817_v3 = vadd.f32 1e-05, %v3815_v28  ;;  %v3976_v28 = vld [vmem:[%s7105_s8 + $0x10] sm:$0xf] }
 0x602   :  { %5967 = vrsqrt.f32 %v3817_v3 }
 0x60b   :  { %v3814_v32 = vpop.xlane.xlu1 %3813 }
 0x60c   :  { %v5968_v35 = vpop.eup %5967  ;;  %v3816_v39 = vmul.f32 0.03125, %v3814_v32  ;;  %v3977_v32 = vld [vmem:[%s7105_s8 + $0x14] sm:$0xf] }
 0x60d   :  { %v3821_v40 = vmul.f32 %v5968_v35, %v3805_v9  ;;  %v3979_v35 = vld [vmem:[%s7105_s8 + $0x1c] sm:$0xf] }
 0x60e   :  { %v3818_v42 = vadd.f32 1e-05, %v3816_v39 }
 0x60f   :  { %v3827_v11 = vmul.f32 %v3826_v34, %v3821_v40 }
 0x610   :  { %5969 = vrsqrt.f32 %v3818_v42 }
 0x611   :  { %v3833_v44 = vadd.f32 %v3832_v41, %v3827_v11 }
 0x613   :  { %v6699_v47 = vadd.f32 %v5997_v45, %v3833_v44 }
 0x615   :  { %5677 = vmatprep.mubr.msk.f32.mxu0 %vm116_vm1, %v6699_v47 }
 0x61a   :  { %v5970_v48 = vpop.eup %5969 }
 0x61b   :  { %v3822_v49 = vmul.f32 %v5970_v48, %v3806_v16 }
 0x61d   :  { %v3828_v50 = vmul.f32 %v3826_v34, %v3822_v49  ;;  %v3978_v34 = vld [vmem:[%s7105_s8 + $0x18] sm:$0xf] }
 0x61f   :  { %v3834_v51 = vadd.f32 %v3832_v41, %v3828_v50 }
 0x621   :  { %v6706_v53 = vadd.f32 %v5998_v52, %v3834_v51 }
 0x623   :  { %5678 = vmatmul.mubr.msk.f32.vlgmr.msra.gmra.mrb[50].mxu0 %vm116_vm1, %v6706_v53 }
 0x624   :  { %5692 = vmatpush3.msra.mxu0 %v4455_v26  ;;  %5693 = vmatprep.mubr.msk.f32.mxu0 %vm1905_vm2, %v4453_v54  ;;  %v3974_v26 = vld [vmem:[%s7105_s8 + $0x8] sm:$0xf] }
 0x627   :  { %5694 = vmatmul.mubr.msk.f32.vlgmr.msra.gmra.mrb[52].mxu0 %vm1905_vm2, %v4454_v55 }
 0x6f6   :  { %v5679_v57 = vpop.f32.mrb[50].mxu0 }
 0x6f7   :  { %v3917_v58 = vpop.f32.mrb[51].mxu0  ;;  %v3923_v4 = vadd.f32 %v5679_v57, %v3844_v1 }
 0x6f8   :  { %v3918_v2 = vadd.f32 %v3917_v58, %v3844_v1 }
 0x6f9   :  { %v5068_v5 = vmul.f32 -1.442695, %v3923_v4 }
 0x6fa   :  { %v5695_v33 = vpop.f32.mrb[52].mxu0  ;;  %v5067_v36 = vmul.f32 -1.442695, %v3918_v2 }
 0x6fb   :  { %v4538_v60 = vadd.f32 %v5695_v33, %v4459_v59  ;;  %v4532_v61 = vpop.f32.mrb[53].mxu0 }
 0x6fc   :  { %v4533_v62 = vadd.f32 %v4532_v61, %v4459_v59  ;;  %5971 = vpow2.f32 %v5067_v36 }
 0x6fd   :  { %v4544_v63 = vsel %vm116_vm1, %v4538_v60, 0.0  ;;  %5973 = vpow2.f32 %v5068_v5 }
 0x6fe   :  { %4545 = vadd.xlane.f32.xlu1 %v4544_v63  ;;  %v4541_v23 = vsel %vm116_vm1, %v4533_v62, 0.0 }
 0x6ff   :  { %4542 = vadd.xlane.f32.xlu0 %v4541_v23 }
 0x706   :  { %v5972_v6 = vpop.eup %5971 }
 0x707   :  { %v3932_v7 = vadd.f32 1.0, %v5972_v6  ;;  %v5974_v8 = vpop.eup %5973 }
 0x708   :  { %v3933_v30 = vadd.f32 1.0, %v5974_v8 }
 0x709   :  { %5975 = vrcp.f32 %v3932_v7 }
 0x70a   :  { %5977 = vrcp.f32 %v3933_v30 }
 0x713   :  { %v5976_v31 = vpop.eup %5975 }
 0x714   :  { %v5978_v38 = vpop.eup %5977 }
 0x72c   :  { %3938 = vxpose.xlu0.b32.start [1/2] (short) (narrow) %v5976_v31, 8 }
 0x730   :  { %3939 = vxpose.xlu0.b32.end [2/2] (short) (narrow) %v5978_v38, 8 }
 0x78b   :  { %v4546_v9 = vpop.xlane.xlu1 %4545 }
 0x78c   :  { %v4548_v10 = vmul.f32 0.03125, %v4546_v9  ;;  %v4543_v12 = vpop.xlane.xlu0 %4542 }
 0x78d   :  { %v4547_v14 = vmul.f32 0.03125, %v4543_v12 }
 0x78e   :  { %v6728_v15 = vsub.f32 %v4538_v60, %v4548_v10 }
 0x78f   :  { %v6730_v16 = vsub.f32 %v4533_v62, %v4547_v14 }
 0x790   :  { %v4552_v17 = vmul.f32 %v6728_v15, %v6728_v15 }
 0x791   :  { %v4551_v13 = vmul.f32 %v6730_v16, %v6730_v16 }
 0x792   :  { %v4556_v18 = vsel %vm116_vm1, %v4552_v17, 0.0 }
 0x793   :  { %4557 = vadd.xlane.f32.xlu1 %v4556_v18  ;;  %v4553_v19 = vsel %vm116_vm1, %v4551_v13, 0.0 }
 0x797   :  { %4554 = vadd.xlane.f32.xlu1 %v4553_v19 }
 0x7ac   :  { %v3954_v24 = vpop.trf.xlu0 }
 0x7ad   :  { %v6756_v3 = vmul.f32 %v3970_v20, %v3954_v24 }
 0x7af   :  { %v4004_v39 = vmul.f32 %v3972_v21, %v6756_v3  ;;  %v4005_v40 = vmul.f32 %v3973_v22, %v6756_v3  ;;  %v4006_v41 = vmul.f32 %v3974_v26, %v6756_v3  ;;  %v4007_v42 = vmul.f32 %v3975_v27, %v6756_v3 }
 0x7b0   :  { %v4008_v11 = vmul.f32 %v3976_v28, %v6756_v3  ;;  %v4009_v44 = vmul.f32 %v3977_v32, %v6756_v3  ;;  %v4010_v45 = vmul.f32 %v3978_v34, %v6756_v3  ;;  %v4011_v48 = vmul.f32 %v3979_v35, %v6756_v3 }
 0x7b1   :  { %v4037_v49 = vsel %vm4036_vm3, %v4004_v39, 0.0  ;;  %v4044_v50 = vsel %vm4036_vm3, %v4005_v40, 0.0  ;;  %v4051_v51 = vsel %vm4036_vm3, %v4006_v41, 0.0  ;;  %v4058_v52 = vsel %vm4036_vm3, %v4007_v42, 0.0  ;;  %v3980_v39 = vld [vmem:[%s7105_s8 + $0x20] sm:$0xf] }
 0x7b2   :  { %v4038_v54 = vrot.slane %v4037_v49, 4  ;;  %v4045_v55 = vrot.slane %v4044_v50, 4  ;;  %v4052_v57 = vrot.slane %v4051_v51, 4  ;;  %v4059_v58 = vrot.slane %v4058_v52, 4  ;;  %v3981_v40 = vld [vmem:[%s7105_s8 + $0x24] sm:$0xf] }
 0x7b3   :  { %v4065_v59 = vsel %vm4036_vm3, %v4008_v11, 0.0  ;;  %v4072_v33 = vsel %vm4036_vm3, %v4009_v44, 0.0  ;;  %v4079_v60 = vsel %vm4036_vm3, %v4010_v45, 0.0  ;;  %v4086_v61 = vsel %vm4036_vm3, %v4011_v48, 0.0  ;;  %v3982_v41 = vld [vmem:[%s7105_s8 + $0x28] sm:$0xf] }
 0x7b4   :  { %v4039_v62 = vadd.f32 %v4038_v54, %v4037_v49  ;;  %v4046_v63 = vadd.f32 %v4045_v55, %v4044_v50  ;;  %v4053_v23 = vadd.f32 %v4052_v57, %v4051_v51  ;;  %v4060_v1 = vadd.f32 %v4059_v58, %v4058_v52  ;;  %v3983_v48 = vld [vmem:[%s7105_s8 + $0x2c] sm:$0xf]  ;;  %v3984_v49 = vld [vmem:[%s7105_s8 + $0x30] sm:$0xf]  ;;  %v3985_v55 = vld [vmem:[%s7105_s8 + $0x34] sm:$0xf] }
 0x7b5   :  { %v4066_v2 = vrot.slane %v4065_v59, 4  ;;  %v4073_v4 = vrot.slane %v4072_v33, 4  ;;  %v4080_v36 = vrot.slane %v4079_v60, 4  ;;  %v4087_v5 = vrot.slane %v4086_v61, 4  ;;  %v3986_v58 = vld [vmem:[%s7105_s8 + $0x38] sm:$0xf] }
 0x7b6   :  { %v4040_v6 = vrot.slane %v4039_v62, 2  ;;  %v4047_v7 = vrot.slane %v4046_v63, 2  ;;  %v4054_v8 = vrot.slane %v4053_v23, 2  ;;  %v4061_v30 = vrot.slane %v4060_v1, 2 }
 0x7b7   :  { %v4067_v31 = vadd.f32 %v4066_v2, %v4065_v59  ;;  %v4074_v38 = vadd.f32 %v4073_v4, %v4072_v33  ;;  %v4081_v9 = vadd.f32 %v4080_v36, %v4079_v60  ;;  %v4088_v10 = vadd.f32 %v4087_v5, %v4086_v61  ;;  %v3987_v59 = vld [vmem:[%s7105_s8 + $0x3c] sm:$0xf] }
 0x7b8   :  { %v4041_v12 = vadd.f32 %v4040_v6, %v4039_v62  ;;  %v4048_v14 = vadd.f32 %v4047_v7, %v4046_v63  ;;  %v4055_v17 = vadd.f32 %v4054_v8, %v4053_v23  ;;  %v4062_v18 = vadd.f32 %v4061_v30, %v4060_v1 }
 0x7b9   :  { %v4068_v13 = vrot.slane %v4067_v31, 2  ;;  %v4075_v19 = vrot.slane %v4074_v38, 2  ;;  %v4082_v20 = vrot.slane %v4081_v9, 2  ;;  %v4089_v21 = vrot.slane %v4088_v10, 2 }
 0x7ba   :  { %v4042_v22 = vrot.slane %v4041_v12, 1  ;;  %v4049_v24 = vrot.slane %v4048_v14, 1  ;;  %v4056_v26 = vrot.slane %v4055_v17, 1  ;;  %v4063_v27 = vrot.slane %v4062_v18, 1 }
 0x7bb   :  { %v4069_v28 = vadd.f32 %v4068_v13, %v4067_v31  ;;  %v4076_v32 = vadd.f32 %v4075_v19, %v4074_v38  ;;  %v4083_v34 = vadd.f32 %v4082_v20, %v4081_v9  ;;  %v4090_v35 = vadd.f32 %v4089_v21, %v4088_v10 }
 0x7bc   :  { %v4043_v42 = vadd.f32 %v4042_v22, %v4041_v12  ;;  %v4050_v11 = vadd.f32 %v4049_v24, %v4048_v14  ;;  %v4057_v44 = vadd.f32 %v4056_v26, %v4055_v17  ;;  %v4064_v45 = vadd.f32 %v4063_v27, %v4062_v18 }
 0x7bd   :  { %v4070_v50 = vrot.slane %v4069_v28, 1  ;;  %v4077_v51 = vrot.slane %v4076_v32, 1  ;;  %v4084_v52 = vrot.slane %v4083_v34, 1  ;;  %v4091_v54 = vrot.slane %v4090_v35, 1 }
 0x7be   :  { %v4294_v57 = vsel %vm4293_vm4, %v4050_v11, %v4043_v42  ;;  %v4012_v33 = vmul.f32 %v3980_v39, %v6756_v3  ;;  %v4013_v60 = vmul.f32 %v3981_v40, %v6756_v3  ;;  %v4014_v61 = vmul.f32 %v3982_v41, %v6756_v3 }
 0x7bf   :  { %v4071_v62 = vadd.f32 %v4070_v50, %v4069_v28  ;;  %v4078_v63 = vadd.f32 %v4077_v51, %v4076_v32  ;;  %v4085_v23 = vadd.f32 %v4084_v52, %v4083_v34  ;;  %v4092_v1 = vadd.f32 %v4091_v54, %v4090_v35 }
 0x7c0   :  { %v4296_v2 = vsel %vm4295_vm5, %v4057_v44, %v4294_v57  ;;  %v4015_v4 = vmul.f32 %v3983_v48, %v6756_v3  ;;  %v4016_v36 = vmul.f32 %v3984_v49, %v6756_v3  ;;  %v4017_v5 = vmul.f32 %v3985_v55, %v6756_v3 }
 0x7c1   :  { %v4298_v6 = vsel %vm4297_vm6, %v4064_v45, %v4296_v2  ;;  %v4018_v7 = vmul.f32 %v3986_v58, %v6756_v3  ;;  %v4019_v8 = vmul.f32 %v3987_v59, %v6756_v3  ;;  %v4093_v30 = vsel %vm4036_vm3, %v4012_v33, 0.0 }
 0x7c2   :  { %v4300_v31 = vsel %vm4299_vm7, %v4071_v62, %v4298_v6  ;;  %v4094_v38 = vrot.slane %v4093_v30, 4  ;;  %v4100_v9 = vsel %vm4036_vm3, %v4013_v60, 0.0  ;;  %v4107_v10 = vsel %vm4036_vm3, %v4014_v61, 0.0  ;;  %v3988_v62 = vld [vmem:[%s7105_s8 + $0x40] sm:$0xf] }
 0x7c3   :  { %v4302_v12 = vsel %vm4301_vm8, %v4078_v63, %v4300_v31  ;;  %v4101_v14 = vrot.slane %v4100_v9, 4  ;;  %v4108_v17 = vrot.slane %v4107_v10, 4  ;;  %v4114_v18 = vsel %vm4036_vm3, %v4015_v4, 0.0  ;;  %v3989_v4 = vld [vmem:[%s7105_s8 + $0x44] sm:$0xf] }
 0x7c4   :  { %v4304_v13 = vsel %vm4303_vm9, %v4085_v23, %v4302_v12  ;;  %v4095_v19 = vadd.f32 %v4094_v38, %v4093_v30  ;;  %v4115_v20 = vrot.slane %v4114_v18, 4  ;;  %v4121_v21 = vsel %vm4036_vm3, %v4016_v36, 0.0 }
 0x7c5   :  { %v4306_v22 = vsel %vm4305_vm10, %v4092_v1, %v4304_v13  ;;  %v4102_v24 = vadd.f32 %v4101_v14, %v4100_v9  ;;  %v4109_v26 = vadd.f32 %v4108_v17, %v4107_v10  ;;  %v4122_v27 = vrot.slane %v4121_v21, 4  ;;  %v3991_v9 = vld [vmem:[%s7105_s8 + $0x4c] sm:$0xf]  ;;  %v3992_v10 = vld [vmem:[%s7105_s8 + $0x50] sm:$0xf] }
 0x7c6   :  { %v4096_v28 = vrot.slane %v4095_v19, 2  ;;  %v4116_v32 = vadd.f32 %v4115_v20, %v4114_v18  ;;  %v4128_v34 = vsel %vm4036_vm3, %v4017_v5, 0.0  ;;  %v4135_v35 = vsel %vm4036_vm3, %v4018_v7, 0.0  ;;  %v3993_v13 = vld [vmem:[%s7105_s8 + $0x54] sm:$0xf] }
 0x7c7   :  { %v4103_v39 = vrot.slane %v4102_v24, 2  ;;  %v4110_v40 = vrot.slane %v4109_v26, 2  ;;  %v4123_v41 = vadd.f32 %v4122_v27, %v4121_v21  ;;  %v4129_v42 = vrot.slane %v4128_v34, 4 }
 0x7c8   :  { %v4097_v11 = vadd.f32 %v4096_v28, %v4095_v19  ;;  %v4117_v44 = vrot.slane %v4116_v32, 2  ;;  %v4136_v45 = vrot.slane %v4135_v35, 4  ;;  %v4142_v48 = vsel %vm4036_vm3, %v4019_v8, 0.0  ;;  %v3990_v8 = vld [vmem:[%s7105_s8 + $0x48] sm:$0xf] }
 0x7c9   :  { %v4104_v49 = vadd.f32 %v4103_v39, %v4102_v24  ;;  %v4111_v50 = vadd.f32 %v4110_v40, %v4109_v26  ;;  %v4124_v51 = vrot.slane %v4123_v41, 2  ;;  %v4130_v52 = vadd.f32 %v4129_v42, %v4128_v34  ;;  %v3994_v24 = vld [vmem:[%s7105_s8 + $0x58] sm:$0xf]  ;;  %v3995_v26 = vld [vmem:[%s7105_s8 + $0x5c] sm:$0xf] }
 0x7ca   :  { %4332 = vxpose.xlu1.b32.start [1/4] (short) (narrow) %v4306_v22, 16  ;;  %v4098_v54 = vrot.slane %v4097_v11, 1  ;;  %v4118_v55 = vadd.f32 %v4117_v44, %v4116_v32  ;;  %v4137_v57 = vadd.f32 %v4136_v45, %v4135_v35  ;;  %v4143_v58 = vrot.slane %v4142_v48, 4 }
 0x7cb   :  { %v4105_v59 = vrot.slane %v4104_v49, 1  ;;  %v4112_v33 = vrot.slane %v4111_v50, 1  ;;  %v4125_v60 = vadd.f32 %v4124_v51, %v4123_v41  ;;  %v4131_v61 = vrot.slane %v4130_v52, 2 }
 0x7cc   :  { %v4099_v63 = vadd.f32 %v4098_v54, %v4097_v11  ;;  %v4119_v23 = vrot.slane %v4118_v55, 1  ;;  %v4138_v1 = vrot.slane %v4137_v57, 2  ;;  %v4144_v2 = vadd.f32 %v4143_v58, %v4142_v48 }
 0x7cd   :  { %v4106_v36 = vadd.f32 %v4105_v59, %v4104_v49  ;;  %v4113_v5 = vadd.f32 %v4112_v33, %v4111_v50  ;;  %v4126_v6 = vrot.slane %v4125_v60, 1  ;;  %v4132_v7 = vadd.f32 %v4131_v61, %v4130_v52 }
 0x7ce   :  { %v4120_v30 = vadd.f32 %v4119_v23, %v4118_v55  ;;  %v4139_v31 = vadd.f32 %v4138_v1, %v4137_v57  ;;  %v4145_v38 = vrot.slane %v4144_v2, 2  ;;  %v4020_v12 = vmul.f32 %v3988_v62, %v6756_v3 }
 0x7cf   :  { %v4127_v14 = vadd.f32 %v4126_v6, %v4125_v60  ;;  %v4133_v17 = vrot.slane %v4132_v7, 1  ;;  %v4307_v18 = vsel %vm4293_vm4, %v4106_v36, %v4099_v63  ;;  %v4021_v19 = vmul.f32 %v3989_v4, %v6756_v3 }
 0x7d0   :  { %v4140_v20 = vrot.slane %v4139_v31, 1  ;;  %v4146_v21 = vadd.f32 %v4145_v38, %v4144_v2  ;;  %v4308_v22 = vsel %vm4295_vm5, %v4113_v5, %v4307_v18  ;;  %v4022_v27 = vmul.f32 %v3990_v8, %v6756_v3 }
 0x7d1   :  { %v4134_v28 = vadd.f32 %v4133_v17, %v4132_v7  ;;  %v4309_v32 = vsel %vm4297_vm6, %v4120_v30, %v4308_v22  ;;  %v4023_v34 = vmul.f32 %v3991_v9, %v6756_v3  ;;  %v4024_v35 = vmul.f32 %v3992_v10, %v6756_v3 }
 0x7d2   :  { %v4141_v39 = vadd.f32 %v4140_v20, %v4139_v31  ;;  %v4147_v40 = vrot.slane %v4146_v21, 1  ;;  %v4310_v41 = vsel %vm4299_vm7, %v4127_v14, %v4309_v32  ;;  %v4025_v42 = vmul.f32 %v3993_v13, %v6756_v3 }
 0x7d3   :  { %v4311_v11 = vsel %vm4301_vm8, %v4134_v28, %v4310_v41  ;;  %v4026_v44 = vmul.f32 %v3994_v24, %v6756_v3  ;;  %v4027_v45 = vmul.f32 %v3995_v26, %v6756_v3  ;;  %v4149_v48 = vsel %vm4036_vm3, %v4020_v12, 0.0  ;;  %v3996_v28 = vld [vmem:[%s7105_s8 + $0x60] sm:$0xf] }
 0x7d4   :  { %v4148_v49 = vadd.f32 %v4147_v40, %v4146_v21  ;;  %v4312_v50 = vsel %vm4303_vm9, %v4141_v39, %v4311_v11  ;;  %v4150_v51 = vrot.slane %v4149_v48, 4  ;;  %v4156_v52 = vsel %vm4036_vm3, %v4021_v19, 0.0 }
 0x7d5   :  { %v4157_v54 = vrot.slane %v4156_v52, 4  ;;  %v4163_v55 = vsel %vm4036_vm3, %v4022_v27, 0.0  ;;  %v4170_v57 = vsel %vm4036_vm3, %v4023_v34, 0.0  ;;  %v4177_v58 = vsel %vm4036_vm3, %v4024_v35, 0.0 }
 0x7d6   :  { %v4313_v59 = vsel %vm4305_vm10, %v4148_v49, %v4312_v50  ;;  %v4151_v33 = vadd.f32 %v4150_v51, %v4149_v48  ;;  %v4164_v60 = vrot.slane %v4163_v55, 4  ;;  %v4171_v61 = vrot.slane %v4170_v57, 4  ;;  %v3999_v51 = vld [vmem:[%s7105_s8 + $0x6c] sm:$0xf] }
 0x7d7   :  { %4333 = vxpose.xlu1.b32.cont [2/4] (short) (narrow) %v4313_v59, 16  ;;  %v4158_v62 = vadd.f32 %v4157_v54, %v4156_v52  ;;  %v4178_v63 = vrot.slane %v4177_v58, 4  ;;  %v4184_v23 = vsel %vm4036_vm3, %v4025_v42, 0.0  ;;  %v4191_v1 = vsel %vm4036_vm3, %v4026_v44, 0.0  ;;  %v3997_v44 = vld [vmem:[%s7105_s8 + $0x64] sm:$0xf] }
 0x7d8   :  { %v4152_v2 = vrot.slane %v4151_v33, 2  ;;  %v4165_v4 = vadd.f32 %v4164_v60, %v4163_v55  ;;  %v4172_v36 = vadd.f32 %v4171_v61, %v4170_v57  ;;  %v4185_v5 = vrot.slane %v4184_v23, 4  ;;  %v4000_v52 = vld [vmem:[%s7105_s8 + $0x70] sm:$0xf]  ;;  %v4002_v60 = vld [vmem:[%s7105_s8 + $0x78] sm:$0xf] }
 0x7d9   :  { %v4159_v6 = vrot.slane %v4158_v62, 2  ;;  %v4179_v7 = vadd.f32 %v4178_v63, %v4177_v58  ;;  %v4192_v8 = vrot.slane %v4191_v1, 4  ;;  %v4198_v30 = vsel %vm4036_vm3, %v4027_v45, 0.0  ;;  %v3998_v45 = vld [vmem:[%s7105_s8 + $0x68] sm:$0xf] }
 0x7da   :  { %v4153_v31 = vadd.f32 %v4152_v2, %v4151_v33  ;;  %v4166_v38 = vrot.slane %v4165_v4, 2  ;;  %v4173_v9 = vrot.slane %v4172_v36, 2  ;;  %v4186_v10 = vadd.f32 %v4185_v5, %v4184_v23  ;;  %v4001_v33 = vld [vmem:[%s7105_s8 + $0x74] sm:$0xf]  ;;  %v4003_v63 = vld [vmem:[%s7105_s8 + $0x7c] sm:$0xf] }
 0x7db   :  { %v4160_v12 = vadd.f32 %v4159_v6, %v4158_v62  ;;  %v4180_v14 = vrot.slane %v4179_v7, 2  ;;  %v4193_v17 = vadd.f32 %v4192_v8, %v4191_v1  ;;  %v4199_v18 = vrot.slane %v4198_v30, 4 }
 0x7dc   :  { %v4154_v13 = vrot.slane %v4153_v31, 1  ;;  %v4167_v19 = vadd.f32 %v4166_v38, %v4165_v4  ;;  %v4174_v20 = vadd.f32 %v4173_v9, %v4172_v36  ;;  %v4187_v21 = vrot.slane %v4186_v10, 2 }
 0x7dd   :  { %v4161_v22 = vrot.slane %v4160_v12, 1  ;;  %v4181_v24 = vadd.f32 %v4180_v14, %v4179_v7  ;;  %v4194_v26 = vrot.slane %v4193_v17, 2  ;;  %v4200_v27 = vadd.f32 %v4199_v18, %v4198_v30 }
 0x7de   :  { %v4155_v32 = vadd.f32 %v4154_v13, %v4153_v31  ;;  %v4168_v34 = vrot.slane %v4167_v19, 1  ;;  %v4175_v35 = vrot.slane %v4174_v20, 1  ;;  %v4188_v39 = vadd.f32 %v4187_v21, %v4186_v10 }
 0x7df   :  { %v4162_v40 = vadd.f32 %v4161_v22, %v4160_v12  ;;  %v4182_v41 = vrot.slane %v4181_v24, 1  ;;  %v4195_v42 = vadd.f32 %v4194_v26, %v4193_v17  ;;  %v4201_v11 = vrot.slane %v4200_v27, 2 }
 0x7e0   :  { %v4169_v48 = vadd.f32 %v4168_v34, %v4167_v19  ;;  %v4176_v49 = vadd.f32 %v4175_v35, %v4174_v20  ;;  %v4189_v50 = vrot.slane %v4188_v39, 1  ;;  %v4028_v54 = vmul.f32 %v3996_v28, %v6756_v3 }
 0x7e1   :  { %v4183_v55 = vadd.f32 %v4182_v41, %v4181_v24  ;;  %v4196_v57 = vrot.slane %v4195_v42, 1  ;;  %v4202_v58 = vadd.f32 %v4201_v11, %v4200_v27  ;;  %v4314_v59 = vsel %vm4293_vm4, %v4162_v40, %v4155_v32 }
 0x7e2   :  { %v4190_v61 = vadd.f32 %v4189_v50, %v4188_v39  ;;  %v4315_v62 = vsel %vm4295_vm5, %v4169_v48, %v4314_v59  ;;  %v4029_v23 = vmul.f32 %v3997_v44, %v6756_v3  ;;  %v4030_v1 = vmul.f32 %v3998_v45, %v6756_v3 }
 0x7e3   :  { %v4197_v2 = vadd.f32 %v4196_v57, %v4195_v42  ;;  %v4203_v4 = vrot.slane %v4202_v58, 1  ;;  %v4316_v36 = vsel %vm4297_vm6, %v4176_v49, %v4315_v62  ;;  %v4031_v5 = vmul.f32 %v3999_v51, %v6756_v3 }
 0x7e4   :  { %v4317_v6 = vsel %vm4299_vm7, %v4183_v55, %v4316_v36  ;;  %v4032_v7 = vmul.f32 %v4000_v52, %v6756_v3  ;;  %v4033_v8 = vmul.f32 %v4001_v33, %v6756_v3  ;;  %v4034_v30 = vmul.f32 %v4002_v60, %v6756_v3 }
 0x7e5   :  { %v4204_v31 = vadd.f32 %v4203_v4, %v4202_v58  ;;  %v4318_v38 = vsel %vm4301_vm8, %v4190_v61, %v4317_v6  ;;  %v4035_v9 = vmul.f32 %v4003_v63, %v6756_v3  ;;  %v4205_v10 = vsel %vm4036_vm3, %v4028_v54, 0.0 }
 0x7e6   :  { %v4319_v12 = vsel %vm4303_vm9, %v4197_v2, %v4318_v38  ;;  %v4206_v14 = vrot.slane %v4205_v10, 4  ;;  %v4212_v17 = vsel %vm4036_vm3, %v4029_v23, 0.0  ;;  %v4219_v18 = vsel %vm4036_vm3, %v4030_v1, 0.0  ;;  %v4364_v1 = vld [vmem:[%s7088_s13] sm:$0xff]  ;;  %v4365_v2 = vld [vmem:[%s7088_s13 + $0x8] sm:$0xff] }
 0x7e7   :  { %v4320_v13 = vsel %vm4305_vm10, %v4204_v31, %v4319_v12  ;;  %v4213_v19 = vrot.slane %v4212_v17, 4  ;;  %v4220_v20 = vrot.slane %v4219_v18, 4  ;;  %v4226_v21 = vsel %vm4036_vm3, %v4031_v5, 0.0 }
 0x7e8   :  { %4334 = vxpose.xlu1.b32.cont [3/4] (short) (narrow) %v4320_v13, 16  ;;  %v4207_v22 = vadd.f32 %v4206_v14, %v4205_v10  ;;  %v4227_v24 = vrot.slane %v4226_v21, 4  ;;  %v4233_v3 = vsel %vm4036_vm3, %v4032_v7, 0.0  ;;  %v4240_v26 = vsel %vm4036_vm3, %v4033_v8, 0.0  ;;  %v4366_v7 = vld [vmem:[%s7088_s13 + $0x10] sm:$0xff]  ;;  %v4367_v8 = vld [vmem:[%s7088_s13 + $0x18] sm:$0xff] }
 0x7e9   :  { %v4214_v27 = vadd.f32 %v4213_v19, %v4212_v17  ;;  %v4221_v28 = vadd.f32 %v4220_v20, %v4219_v18  ;;  %v4234_v32 = vrot.slane %v4233_v3, 4  ;;  %v4241_v34 = vrot.slane %v4240_v26, 4  ;;  %v4581_v19 = vld [vmem:[%s7090_s15] sm:$0xff]  ;;  %v4582_v20 = vld [vmem:[%s7090_s15 + $0x8] sm:$0xff] }
 0x7ea   :  { %v4208_v35 = vrot.slane %v4207_v22, 2  ;;  %v4228_v39 = vadd.f32 %v4227_v24, %v4226_v21  ;;  %v4247_v40 = vsel %vm4036_vm3, %v4034_v30, 0.0  ;;  %v4254_v41 = vsel %vm4036_vm3, %v4035_v9, 0.0 }
 0x7eb   :  { %v4215_v42 = vrot.slane %v4214_v27, 2  ;;  %v4222_v11 = vrot.slane %v4221_v28, 2  ;;  %v4235_v44 = vadd.f32 %v4234_v32, %v4233_v3  ;;  %v4242_v45 = vadd.f32 %v4241_v34, %v4240_v26 }
 0x7ec   :  { %v4209_v48 = vadd.f32 %v4208_v35, %v4207_v22  ;;  %v4229_v49 = vrot.slane %v4228_v39, 2  ;;  %v4248_v50 = vrot.slane %v4247_v40, 4  ;;  %v4255_v51 = vrot.slane %v4254_v41, 4 }
 0x7ed   :  { %v4216_v52 = vadd.f32 %v4215_v42, %v4214_v27  ;;  %v4223_v54 = vadd.f32 %v4222_v11, %v4221_v28  ;;  %v4236_v55 = vrot.slane %v4235_v44, 2  ;;  %v4243_v57 = vrot.slane %v4242_v45, 2 }
 0x7ee   :  { %v4210_v58 = vrot.slane %v4209_v48, 1  ;;  %v4230_v59 = vadd.f32 %v4229_v49, %v4228_v39  ;;  %v4249_v33 = vadd.f32 %v4248_v50, %v4247_v40  ;;  %v4256_v60 = vadd.f32 %v4255_v51, %v4254_v41 }
 0x7ef   :  { %v4217_v61 = vrot.slane %v4216_v52, 1  ;;  %v4224_v62 = vrot.slane %v4223_v54, 1  ;;  %v4237_v63 = vadd.f32 %v4236_v55, %v4235_v44  ;;  %v4244_v23 = vadd.f32 %v4243_v57, %v4242_v45 }
 0x7f0   :  { %v4211_v4 = vadd.f32 %v4210_v58, %v4209_v48  ;;  %v4231_v36 = vrot.slane %v4230_v59, 1  ;;  %v4250_v5 = vrot.slane %v4249_v33, 2  ;;  %v4257_v6 = vrot.slane %v4256_v60, 2 }
 0x7f1   :  { %v4218_v30 = vadd.f32 %v4217_v61, %v4216_v52  ;;  %v4225_v31 = vadd.f32 %v4224_v62, %v4223_v54  ;;  %v4238_v38 = vrot.slane %v4237_v63, 1  ;;  %v4245_v9 = vrot.slane %v4244_v23, 1  ;;  %v4584_v62 = vld [vmem:[%s7090_s15 + $0x18] sm:$0xff] }
 0x7f2   :  { %v4251_v10 = vadd.f32 %v4250_v5, %v4249_v33  ;;  %v4258_v12 = vadd.f32 %v4257_v6, %v4256_v60  ;;  %v5889_v14 = vpack.c.bf16 %v4365_v2, %v4364_v1  ;;  %v4232_v17 = vadd.f32 %v4231_v36, %v4230_v59  ;;  %v6972_v5 = vld [vmem:[%s7093_s18 + $0x8] sm:$0xff] }
 0x7f3   :  { %v4321_v18 = vsel %vm4293_vm4, %v4218_v30, %v4211_v4  ;;  %v5893_v13 = vpack.c.bf16 %v4367_v8, %v4366_v7  ;;  %v4239_v21 = vadd.f32 %v4238_v38, %v4237_v63  ;;  %v4246_v26 = vadd.f32 %v4245_v9, %v4244_v23 }
 0x7f4   :  { %v4252_v22 = vrot.slane %v4251_v10, 1  ;;  %v4259_v24 = vrot.slane %v4258_v12, 1  ;;  %v4322_v3 = vsel %vm4295_vm5, %v4225_v31, %v4321_v18  ;;  %5890 = vmatprep.subr.bf16.mxu1 %v5889_v14  ;;  %v5897_v34 = vpack.c.bf16 %v4582_v20, %v4581_v19 }
 0x7f5   :  { %v4323_v27 = vsel %vm4297_vm6, %v4232_v17, %v4322_v3  ;;  %5892 = vmatpush3.bf16.msra.mxu1 %v5889_v14  ;;  %v4569_v51 = vsub.s32 6, %v6644_v37  ;;  %v4575_v55 = vsub.s32 7, %v6644_v37  ;;  %v4588_v6 = vrot.slane %v6972_v5, %v3790_v43 }
 0x7f6   :  { %v4253_v28 = vadd.f32 %v4252_v22, %v4251_v10  ;;  %v4324_v32 = vsel %vm4299_vm7, %v4239_v21, %v4323_v27  ;;  %5894 = vmatprep.subr.bf16.mxu1 %v5893_v13  ;;  %v4260_v35 = vadd.f32 %v4259_v24, %v4258_v12 }
 0x7f7   :  { %v4325_v39 = vsel %vm4301_vm8, %v4246_v26, %v4324_v32  ;;  %v4570_v54 = vrot.slane %v6653_v46, %v4569_v51  ;;  %v4576_v59 = vrot.slane %v6653_v46, %v4575_v55  ;;  %v4370_v32 = vsub.s32 4, %v6644_v37 }
 0x7f8   :  { %v4326_v40 = vsel %vm4303_vm9, %v4253_v28, %v4325_v39 }
 0x7f9   :  { %v4327_v41 = vsel %vm4305_vm10, %v4260_v35, %v4326_v40  ;;  %5896 = vmatpush3.bf16.msra.mxu1 %v5893_v13  ;;  %v4705_v40 = vrot.slane %v6972_v5, %v3831_v25 }
 0x7fa   :  { %4335 = vxpose.xlu1.b32.end [4/4] (short) (narrow) %v4327_v41, 16  ;;  %5898 = vmatprep.subr.bf16.mxu1 %v5897_v34  ;;  %v5999_v41 = vld [vmem:[%s7093_s18] sm:$0xff] }
 0x820   :  { %v4558_v42 = vpop.xlane.xlu1 %4557 }
 0x821   :  { %v4560_v48 = vmul.f32 0.03125, %v4558_v42  ;;  %v4371_v42 = vrot.slane %v5999_v41, %v4370_v32 }
 0x823   :  { %v4562_v49 = vadd.f32 1e-05, %v4560_v48 }
 0x824   :  { %v4555_v11 = vpop.xlane.xlu1 %4554 }
 0x825   :  { %v4559_v44 = vmul.f32 0.03125, %v4555_v11 }
 0x827   :  { %v4561_v45 = vadd.f32 1e-05, %v4559_v44 }
 0x829   :  { %5979 = vrsqrt.f32 %v4561_v45 }
 0x82a   :  { %5981 = vrsqrt.f32 %v4562_v49 }
 0x833   :  { %v5980_v50 = vpop.eup %5979 }
 0x834   :  { %v4565_v52 = vmul.f32 %v5980_v50, %v6730_v16  ;;  %v5982_v57 = vpop.eup %5981  ;;  %v4583_v16 = vld [vmem:[%s7090_s15 + $0x10] sm:$0xff] }
 0x835   :  { %v4566_v33 = vmul.f32 %v5982_v57, %v6728_v15  ;;  %v5901_v23 = vpack.c.bf16 %v4584_v62, %v4583_v16 }
 0x836   :  { %v4571_v58 = vmul.f32 %v4570_v54, %v4565_v52 }
 0x837   :  { %v4572_v63 = vmul.f32 %v4570_v54, %v4566_v33 }
 0x838   :  { %v4577_v61 = vadd.f32 %v4576_v59, %v4571_v58 }
 0x839   :  { %v4578_v46 = vadd.f32 %v4576_v59, %v4572_v63 }
 0x83a   :  { %v4579_v2 = vmax.f32 %v4577_v61, 0.0 }
 0x83b   :  { %v4580_v15 = vmax.f32 %v4578_v46, 0.0 }
 0x86e   :  { %v4348_v60 = vpop.trf.xlu1 }
 0x86f   :  { %5688 = vmatprep.mubr.msk.f32.mxu1 %vm116_vm1, %v4348_v60 }
 0x872   :  { %v4349_v1 = vpop.trf.xlu1 }
 0x873   :  { %5689 = vmatmul.mubr.msk.f32.vlgmr.msra.gmra.mrb[46].mxu1 %vm116_vm1, %v4349_v1 }
 0x874   :  { %5900 = vmatpush3.bf16.msra.mxu1 %v5897_v34  ;;  %5704 = vmatprep.mubr.msk.f32.mxu1 %vm116_vm1, %v4579_v2  ;;  %v4699_v34 = vrot.slane %v6972_v5, %v3825_v29 }
 0x875   :  { %5902 = vmatprep.subr.bf16.mxu1 %v5901_v23 }
 0x878   :  { %5904 = vmatpush3.bf16.msra.mxu1 %v5901_v23 }
 0x87b   :  { %5705 = vmatmul.mubr.msk.f32.vlgmr.msra.gmra.mrb[48].mxu1 %vm116_vm1, %v4580_v15 }
 0x946   :  { %v5690_v4 = vpop.f32.mrb[46].mxu1 }
 0x947   :  { %v4444_v36 = vpop.f32.mrb[47].mxu1  ;;  %v4450_v57 = vadd.f32 %v5690_v4, %v4371_v42 }
 0x948   :  { %v4445_v49 = vadd.f32 %v4444_v36, %v4371_v42 }
 0x94e   :  { %v5706_v7 = vpop.f32.mrb[48].mxu1 }
 0x94f   :  { %v4667_v8 = vadd.f32 %v5706_v7, %v4588_v6  ;;  %v4661_v30 = vpop.f32.mrb[49].mxu1  ;;  %v4755_v7 = vld [vmem:[%s7091_s16 + $0x8] sm:$0xff] }
 0x950   :  { %v4662_v31 = vadd.f32 %v4661_v30, %v4588_v6 }
 0x951   :  { %v4673_v38 = vsel %vm116_vm1, %v4667_v8, 0.0 }
 0x952   :  { %4674 = vadd.xlane.f32.xlu1 %v4673_v38  ;;  %v4670_v9 = vsel %vm116_vm1, %v4662_v31, 0.0 }
 0x953   :  { %4671 = vadd.xlane.f32.xlu0 %v4670_v9  ;;  %v4845_v9 = vld [vmem:[%s7092_s17] sm:$0xff] }
 0x9df   :  { %v4675_v10 = vpop.xlane.xlu1 %4674 }
 0x9e0   :  { %v4677_v12 = vmul.f32 0.03125, %v4675_v10  ;;  %v4672_v14 = vpop.xlane.xlu0 %4671  ;;  %v4846_v10 = vld [vmem:[%s7092_s17 + $0x8] sm:$0xff] }
 0x9e1   :  { %v4676_v17 = vmul.f32 0.03125, %v4672_v14  ;;  %v5913_v14 = vpack.c.bf16 %v4846_v10, %v4845_v9 }
 0x9e2   :  { %v4679_v18 = vsub.f32 %v4667_v8, %v4677_v12  ;;  %v4756_v8 = vld [vmem:[%s7091_s16 + $0x10] sm:$0xff] }
 0x9e3   :  { %v4678_v13 = vsub.f32 %v4662_v31, %v4676_v17  ;;  %v4757_v31 = vld [vmem:[%s7091_s16 + $0x18] sm:$0xff]  ;;  %v4847_v12 = vld [vmem:[%s7092_s17 + $0x10] sm:$0xff]  ;;  %5914 = vmatprep.subr.bf16.mxu1 %v5913_v14 }
 0x9e4   :  { %v4681_v43 = vmul.f32 %v4679_v18, %v4679_v18  ;;  %v5909_v38 = vpack.c.bf16 %v4757_v31, %v4756_v8  ;;  %v4848_v17 = vld [vmem:[%s7092_s17 + $0x18] sm:$0xff]  ;;  %5916 = vmatpush3.bf16.msra.mxu1 %v5913_v14 }
 0x9e5   :  { %v4680_v19 = vmul.f32 %v4678_v13, %v4678_v13 }
 0x9e6   :  { %v4685_v21 = vsel %vm116_vm1, %v4681_v43, 0.0 }
 0x9e7   :  { %v4682_v20 = vsel %vm116_vm1, %v4680_v19, 0.0  ;;  %v4850_v19 = vld [vmem:[%s7092_s17 + $0x28] sm:$0xff] }
 0x9e8   :  { %4683 = vadd.xlane.f32.xlu0 %v4682_v20 }
 0x9ec   :  { %4686 = vadd.xlane.f32.xlu0 %v4685_v21 }
 0xa75   :  { %v4684_v22 = vpop.xlane.xlu0 %4683 }
 0xa76   :  { %v4688_v24 = vmul.f32 0.03125, %v4684_v22 }
 0xa78   :  { %v4690_v3 = vadd.f32 1e-05, %v4688_v24 }
 0xa79   :  { %v4687_v26 = vpop.xlane.xlu0 %4686 }
 0xa7a   :  { %5983 = vrsqrt.f32 %v4690_v3  ;;  %v4689_v27 = vmul.f32 0.03125, %v4687_v26 }
 0xa7c   :  { %v4691_v28 = vadd.f32 1e-05, %v4689_v27  ;;  %v4745_v27 = vrot.slane %v6972_v5, %v3843_v0  ;;  %v4851_v0 = vld [vmem:[%s7092_s17 + $0x30] sm:$0xff] }
 0xa7e   :  { %5985 = vrsqrt.f32 %v4691_v28 }
 0xa84   :  { %v5984_v35 = vpop.eup %5983 }
 0xa85   :  { %v4694_v39 = vmul.f32 %v5984_v35, %v4678_v13  ;;  %v4849_v13 = vld [vmem:[%s7092_s17 + $0x20] sm:$0xff] }
 0xa86   :  { %v5921_v20 = vpack.c.bf16 %v4850_v19, %v4849_v13 }
 0xa87   :  { %v4700_v11 = vmul.f32 %v4699_v34, %v4694_v39 }
 0xa88   :  { %v5986_v44 = vpop.eup %5985 }
 0xa89   :  { %v4695_v45 = vmul.f32 %v5986_v44, %v4679_v18  ;;  %v4706_v48 = vadd.f32 %v4705_v40, %v4700_v11  ;;  %v5917_v18 = vpack.c.bf16 %v4848_v17, %v4847_v12  ;;  %v5079_v17 = vld [vmem:[%s7093_s18 + $0x10] ss:$0 sm:$0xff] }
 0xa8b   :  { %v4708_v50 = vmax.f32 %v4706_v48, 0.0  ;;  %v4701_v29 = vmul.f32 %v4699_v34, %v4695_v45  ;;  %5918 = vmatprep.subr.bf16.mxu1 %v5917_v18  ;;  %v4751_v34 = vrot.slane %v6972_v5, %v4370_v32  ;;  %v4852_v45 = vld [vmem:[%s7092_s17 + $0x38] sm:$0xff]  ;;  %v4761_v48 = vrot.slane %v6972_v5, %v4458_v56 }
 0xa8c   :  { %5920 = vmatpush3.bf16.msra.mxu1 %v5917_v18  ;;  %v5925_v32 = vpack.c.bf16 %v4852_v45, %v4851_v0 }
 0xa8d   :  { %v4710_v52 = vadd.f32 %v4708_v50, %v4445_v49  ;;  %v4707_v54 = vadd.f32 %v4705_v40, %v4701_v29  ;;  %5922 = vmatprep.subr.bf16.mxu1 %v5921_v20 }
 0xa8f   :  { %v4712_v58 = vadd.f32 %v4710_v52, %v6699_v47  ;;  %v4709_v25 = vmax.f32 %v4707_v54, 0.0 }
 0xa90   :  { %5924 = vmatpush3.bf16.msra.mxu1 %v5921_v20 }
 0xa91   :  { %v4714_v59 = vadd.f32 %v4712_v58, %v6699_v47  ;;  %v4711_v33 = vadd.f32 %v4709_v25, %v4450_v57  ;;  %5926 = vmatprep.subr.bf16.mxu1 %v5925_v32  ;;  %v4856_v58 = vrot.slane %v6972_v5, %v4569_v51 }
 0xa93   :  { %v4716_v60 = vsel %vm116_vm1, %v4714_v59, 0.0  ;;  %v4713_v61 = vadd.f32 %v4711_v33, %v6706_v53 }
 0xa94   :  { %4717 = vadd.xlane.f32.xlu0 %v4716_v60  ;;  %5928 = vmatpush3.bf16.msra.mxu1 %v5925_v32 }
 0xa95   :  { %v4715_v16 = vadd.f32 %v4713_v61, %v6706_v53  ;;  %v4754_v53 = vld [vmem:[%s7091_s16] sm:$0xff] }
 0xa96   :  { %v5905_v30 = vpack.c.bf16 %v4755_v7, %v4754_v53 }
 0xa97   :  { %v4719_v62 = vsel %vm116_vm1, %v4715_v16, 0.0 }
 0xa98   :  { %4720 = vadd.xlane.f32.xlu0 %v4719_v62  ;;  %5906 = vmatprep.subr.bf16.mxu0 %v5905_v30 }
 0xa99   :  { %5908 = vmatpush3.bf16.msra.mxu0 %v5905_v30 }
 0xa9a   :  { %5910 = vmatprep.subr.bf16.mxu0 %v5909_v38 }
 0xa9d   :  { %5912 = vmatpush3.bf16.msra.mxu0 %v5909_v38  ;;  %v4970_v38 = vrot.slane %v6972_v5, %v4575_v55 }
 0xb21   :  { %v4718_v63 = vpop.xlane.xlu0 %4717 }
 0xb22   :  { %v4722_v23 = vmul.f32 0.03125, %v4718_v63 }
 0xb24   :  { %v4724_v1 = vsub.f32 %v4714_v59, %v4722_v23 }
 0xb25   :  { %v4721_v2 = vpop.xlane.xlu0 %4720 }
 0xb26   :  { %v4723_v46 = vmul.f32 0.03125, %v4721_v2  ;;  %v4726_v15 = vmul.f32 %v4724_v1, %v4724_v1 }
 0xb28   :  { %v4725_v4 = vsub.f32 %v4715_v16, %v4723_v46  ;;  %v4728_v47 = vsel %vm116_vm1, %v4726_v15, 0.0 }
 0xb29   :  { %4729 = vadd.xlane.f32.xlu0 %v4728_v47 }
 0xb2a   :  { %v4727_v36 = vmul.f32 %v4725_v4, %v4725_v4 }
 0xb2c   :  { %v4731_v6 = vsel %vm116_vm1, %v4727_v36, 0.0 }
 0xb2d   :  { %4732 = vadd.xlane.f32.xlu1 %v4731_v6 }
 0xbb6   :  { %v4730_v43 = vpop.xlane.xlu0 %4729 }
 0xbb7   :  { %v4734_v21 = vmul.f32 0.03125, %v4730_v43 }
 0xbb9   :  { %v4736_v22 = vadd.f32 1e-05, %v4734_v21 }
 0xbba   :  { %v4733_v24 = vpop.xlane.xlu1 %4732 }
 0xbbb   :  { %5987 = vrsqrt.f32 %v4736_v22  ;;  %v4735_v3 = vmul.f32 0.03125, %v4733_v24 }
 0xbbd   :  { %v4737_v26 = vadd.f32 1e-05, %v4735_v3 }
 0xbbf   :  { %5989 = vrsqrt.f32 %v4737_v26 }
 0xbc5   :  { %v5988_v28 = vpop.eup %5987 }
 0xbc6   :  { %v4740_v35 = vmul.f32 %v5988_v28, %v4724_v1 }
 0xbc8   :  { %v4746_v39 = vmul.f32 %v4745_v27, %v4740_v35 }
 0xbc9   :  { %v5990_v40 = vpop.eup %5989 }
 0xbca   :  { %v4741_v41 = vmul.f32 %v5990_v40, %v4725_v4  ;;  %v4752_v42 = vadd.f32 %v4751_v34, %v4746_v39 }
 0xbcc   :  { %5715 = vmatprep.mubr.msk.f32.mxu0 %vm116_vm1, %v4752_v42  ;;  %v4747_v11 = vmul.f32 %v4745_v27, %v4741_v41 }
 0xbce   :  { %v4753_v44 = vadd.f32 %v4751_v34, %v4747_v11 }
 0xbd0   :  { %5716 = vmatmul.mubr.msk.f32.vlgmr.msra.gmra.mrb[54].mxu0 %vm116_vm1, %v4753_v44 }
 0xca3   :  { %v5717_v49 = vpop.f32.mrb[54].mxu0 }
 0xca4   :  { %v4840_v50 = vadd.f32 %v5717_v49, %v4761_v48  ;;  %v4834_v29 = vpop.f32.mrb[55].mxu0 }
 0xca5   :  { %v4835_v52 = vadd.f32 %v4834_v29, %v4761_v48 }
 0xca6   :  { %v4844_v57 = vmax.f32 %v4840_v50, 0.0 }
 0xca7   :  { %v4843_v54 = vmax.f32 %v4835_v52, 0.0 }
 0xca9   :  { %5734 = vmatprep.mubr.msk.f32.mxu1 %vm4857_vm11, %v4843_v54 }
 0xcaa   :  { %5735 = vmatmul.mubr.msk.f32.vlgmr.msra.gmra.mrb[50].mxu1 %vm4857_vm11, %v4844_v57 }
 0xd7d   :  { %v5736_v25 = vpop.f32.mrb[50].mxu1 }
 0xd7e   :  { %v4936_v59 = vadd.f32 %v5736_v25, %v4856_v58  ;;  %v4930_v33 = vpop.f32.mrb[51].mxu1 }
 0xd7f   :  { %v4931_v60 = vadd.f32 %v4930_v33, %v4856_v58 }
 0xd80   :  { %v4940_v61 = vadd.f32 %v4936_v59, %v4753_v44 }
 0xd81   :  { %v4939_v16 = vadd.f32 %v4931_v60, %v4752_v42 }
 0xd82   :  { %v4944_v56 = vsel %vm116_vm1, %v4940_v61, 0.0 }
 0xd83   :  { %4945 = vadd.xlane.f32.xlu1 %v4944_v56  ;;  %v4941_v62 = vsel %vm116_vm1, %v4939_v16, 0.0 }
 0xd84   :  { %4942 = vadd.xlane.f32.xlu0 %v4941_v62 }
 0xe10   :  { %v4946_v63 = vpop.xlane.xlu1 %4945 }
 0xe11   :  { %v4948_v23 = vmul.f32 0.03125, %v4946_v63  ;;  %v4943_v1 = vpop.xlane.xlu0 %4942 }
 0xe12   :  { %v4947_v2 = vmul.f32 0.03125, %v4943_v1 }
 0xe13   :  { %v4950_v46 = vsub.f32 %v4940_v61, %v4948_v23 }
 0xe14   :  { %v4949_v15 = vsub.f32 %v4939_v16, %v4947_v2 }
 0xe15   :  { %v4952_v4 = vmul.f32 %v4950_v46, %v4950_v46 }
 0xe16   :  { %v4951_v51 = vmul.f32 %v4949_v15, %v4949_v15 }
 0xe17   :  { %v4956_v47 = vsel %vm116_vm1, %v4952_v4, 0.0 }
 0xe18   :  { %4957 = vadd.xlane.f32.xlu1 %v4956_v47  ;;  %v4953_v36 = vsel %vm116_vm1, %v4951_v51, 0.0 }
 0xe19   :  { %4954 = vadd.xlane.f32.xlu0 %v4953_v36 }
 0xea5   :  { %v4958_v6 = vpop.xlane.xlu1 %4957 }
 0xea6   :  { %v4960_v53 = vmul.f32 0.03125, %v4958_v6  ;;  %v4955_v7 = vpop.xlane.xlu0 %4954 }
 0xea7   :  { %v4959_v8 = vmul.f32 0.03125, %v4955_v7 }
 0xea8   :  { %v4962_v30 = vadd.f32 1e-05, %v4960_v53 }
 0xea9   :  { %v4961_v31 = vadd.f32 1e-05, %v4959_v8 }
 0xeaa   :  { %5991 = vrsqrt.f32 %v4962_v30 }
 0xeab   :  { %5993 = vrsqrt.f32 %v4961_v31 }
 0xeb4   :  { %v5992_v9 = vpop.eup %5991 }
 0xeb5   :  { %v5994_v10 = vpop.eup %5993  ;;  %v4966_v12 = vmul.f32 %v5992_v9, %v4950_v46 }
 0xeb6   :  { %v4965_v14 = vmul.f32 %v5994_v10, %v4949_v15 }
 0xeb7   :  { %v4972_v18 = vmul.f32 %v4970_v38, %v4966_v12 }
 0xeb8   :  { %v4971_v13 = vmul.f32 %v4970_v38, %v4965_v14 }
 0xeb9   :  { %v4978_v19 = vadd.f32 %v5079_v17, %v4972_v18 }
 0xeba   :  { %v4977_v20 = vadd.f32 %v5079_v17, %v4971_v13 }
 0xebb   :  { %4980 = vst.msk [vmem:[#allocation2 + $0x8] sm:$0xff] %vm116_vm1, %v4978_v19 }
 0xebc   :  { %4979 = vst.msk [vmem:[#allocation2] sm:$0xff] %vm116_vm1, %v4977_v20 }
 0xebd   :  { %6011 = shalt.err (!%p6008_p4)
}
 0xebe   :  { %s6012_s10 = scalar_lea.hbm %s7094_s19, 256 }
 0xebf   :  { %p6013_p5 = scmp.ne.s32.totalorder %s7094_s19, %s6012_s10  ;;  %p6016_p6 = scmp.lt.u32.totalorder %s6012_s10, %s7094_s19 }
 0xec1   :  { %p6018_p7 = pnand %p6016_p6, %p6013_p5 }
 0xec3   :  { %6021 = shalt.err (!%p6018_p7)
}
 0xec4   :  { %s6028_s27 = smov 128   ;;  %s6029_s8 = smov 8  }
 0xec5   :  { %4992 = dma.vmem_to_hbm [thread:$0]  %s4987_s23, 256, %s7094_s19, [#allocation3], %s6028_s27, %s6028_s27, %s6029_s8  }
 0xec6   :  { %6022 = dma.done.wait [#allocation3], 256  }
 0xec7   :  { %6023 = vsyncadd [#allocation3], 4294967040 }
 0xec8   :  { %4996 = vsyncpa [#allocation3], 1 }

</bundles_post_ra>
